<compile_context>
chip_gen: v7x
topology: tpu7x:2x2x1
jax: 0.10.0
libtpu: 0.0.40
codegen_flags: <defaults>
</compile_context>

<pallas_src>
import functools

import jax
import jax.numpy as jnp
from jax import lax
from jax.experimental import pallas as pl
from jax.experimental.pallas import tpu as pltpu


def _fused_attn_kernel(x_ref, wqkv_ref, bqkv_ref, wproj_ref, bproj_ref, o_ref,
                       *, num_chunks):
    bsz, n, c = x_ref.shape
    g = num_chunks

    # One wide QKV projection for every row of this block: (bsz*N, C) @ (C, 3C).
    # Bigger M fills the MXU better and amortizes fixed per-matmul cost.
    x_all = x_ref[...].reshape(bsz * n, c)                                 # bf16
    qkv = jnp.dot(x_all, wqkv_ref[...],
                  preferred_element_type=jnp.float32) + bqkv_ref[...]      # (bsz*N, 3C) f32

    # Per-batch attention (unrolled Python loop; bounds vreg live ranges).
    for bi in range(bsz):
        q = qkv[bi * n:(bi + 1) * n, :c]          # scale pre-folded into Wq/bq
        k = qkv[bi * n:(bi + 1) * n, c:2 * c]
        v = qkv[bi * n:(bi + 1) * n, 2 * c:]

        # scores = q @ k^T (contract last dims, no materialized transpose); bf16 MXU,
        # f32 accumulate.
        s = lax.dot_general(q.astype(jnp.bfloat16), k.astype(jnp.bfloat16),
                            (((1,), (1,)), ((), ())),
                            preferred_element_type=jnp.float32)            # (N, N)

        # softmax in f32 (exp on EUP, approx reciprocal on EUP slot).
        s = s - jnp.max(s, axis=-1, keepdims=True)
        e = jnp.exp(s)
        p = e * pl.reciprocal(jnp.sum(e, axis=-1, keepdims=True), approx=True)
        # TODO(synk): attn_drop / proj_drop implemented as identity (eval mode);
        # PyTorch Dropout(p=1) in train mode would zero the tensor entirely.

        av = jnp.dot(p.astype(jnp.bfloat16), v.astype(jnp.bfloat16),
                     preferred_element_type=jnp.float32)                   # (N, C)
        av = av.astype(jnp.bfloat16)

        # PyTorch: (attn @ v).transpose(1, 2).reshape(N, C) @ w_proj + b_proj.
        # With g = N // C the result rows satisfy
        #   out[a*g + r, m] = sum_j av[r*C + j, a] * w_proj[j, m] + b_proj[m]
        # so, viewed as a (C, g*C) matrix, out == concat_r(av_block_r^T @ w_proj, axis=1)
        # + tile(b_proj, g).  Emit that lane-dense block; the wrapper reshape is free.
        parts = []
        for r in range(g):
            blk = av[r * c:(r + 1) * c, :]                                 # (C, C)
            parts.append(lax.dot_general(blk, wproj_ref[...],
                                         (((0,), (0,)), ((), ())),
                                         preferred_element_type=jnp.float32))
        y = parts[0] if g == 1 else jnp.concatenate(parts, axis=1)         # (C, g*C)
        o_ref[bi] = (y + bproj_ref[...]).astype(o_ref.dtype)


def attention_forward(x, w_qkv, b_qkv, w_proj, b_proj, scale):
    """x: (B, N, C) f32. w_qkv: (C, 3C), b_qkv: (3C,), w_proj: (C, C), b_proj: (C,)."""
    B, N, C = x.shape
    # TODO(synk): fused in-kernel scramble assumes N % C == 0 (true for this model's
    # shapes); the general case would fall back to a host-side transpose+reshape.
    assert N % C == 0, "fused scramble requires N % C == 0"
    g = N // C
    out_dtype = x.dtype

    # Fold the attention scale into the q columns of the projection (host-side, free):
    #   (x @ Wq + bq) * scale == x @ (Wq * scale) + (bq * scale)
    w_qkv = w_qkv.at[:, :C].multiply(scale)
    b_qkv = b_qkv.at[:C].multiply(scale)

    # bf16 MXU operands (accumulation stays f32 inside the kernel); biases stay f32.
    x_bf = x.astype(jnp.bfloat16)
    w_qkv_bf = w_qkv.astype(jnp.bfloat16)
    w_proj_bf = w_proj.astype(jnp.bfloat16)
    b_qkv_f = b_qkv.reshape(1, 3 * C).astype(jnp.float32)
    b_proj_tiled = jnp.tile(b_proj, g).reshape(1, g * C).astype(jnp.float32)

    # 2 batch elements per grid step: keeps both v7x TensorCores busy (parallel axis),
    # and on single-TC v5e/v6e it still halves per-step overhead / doubles matmul M.
    steps = 2 if (B >= 2 and B % 2 == 0) else 1
    bb = B // steps

    cost = pl.CostEstimate(
        flops=int(2 * B * N * (4 * C * C + 2 * N * C)),
        transcendentals=int(B * N * N),
        bytes_accessed=int(B * N * C * 2          # x (bf16 in)
                           + B * N * C * 4        # out (f32)
                           + (3 * C * C + C * C) * 2
                           + (3 * C + N) * 4),
    )

    kernel = functools.partial(_fused_attn_kernel, num_chunks=g)
    out = pl.pallas_call(
        kernel,
        out_shape=jax.ShapeDtypeStruct((B, C, g * C), out_dtype),
        grid_spec=pltpu.PrefetchScalarGridSpec(
            num_scalar_prefetch=0,
            grid=(steps,),
            in_specs=[
                pl.BlockSpec((bb, N, C), lambda b: (b, 0, 0)),     # x (bf16)
                pl.BlockSpec((C, 3 * C), lambda b: (0, 0)),        # w_qkv (bf16, fused)
                pl.BlockSpec((1, 3 * C), lambda b: (0, 0)),        # b_qkv (f32)
                pl.BlockSpec((C, C), lambda b: (0, 0)),            # w_proj (bf16)
                pl.BlockSpec((1, g * C), lambda b: (0, 0)),        # b_proj tiled (f32)
            ],
            out_specs=pl.BlockSpec((bb, C, g * C), lambda b: (b, 0, 0)),
        ),
        compiler_params=pltpu.CompilerParams(
            dimension_semantics=("parallel",),
        ),
        cost_estimate=cost,
    )(x_bf, w_qkv_bf, b_qkv_f, w_proj_bf, b_proj_tiled)

    # (B, C, g, C) in row-major order is exactly (B, N, C) with row i = a*g + r,
    # i.e. the transpose(1,2).reshape ordering -> free contiguous reshape.
    return out.reshape(B, N, C)


def _reference(x, w_qkv, b_qkv, w_proj, b_proj, scale):
    B, N, C = x.shape
    qkv = x @ w_qkv + b_qkv
    q, k, v = qkv[..., :C], qkv[..., C:2 * C], qkv[..., 2 * C:]
    attn = jnp.einsum("bnd,bmd->bnm", q, k) * scale
    attn = jax.nn.softmax(attn, axis=-1)
    av = jnp.einsum("bnm,bmd->bnd", attn, v)
    x2 = jnp.transpose(av, (0, 2, 1)).reshape(B, N, C)
    return x2 @ w_proj + b_proj


if __name__ == "__main__":
    # Shapes consistent with the module's example input qkv = randn(4, 128, 64),
    # treating embed_dims == last dim == 64.
    B, N, C = 4, 128, 64
    embed_dims = C
    qk_scale = 1
    scale = float(qk_scale or embed_dims ** (-0.5))

    key = jax.random.PRNGKey(0)
    kx, kw1, kb1, kw2, kb2 = jax.random.split(key, 5)

    x = jax.random.normal(kx, (B, N, C), dtype=jnp.float32)
    # Deterministic parameter init (shapes from nn.Linear(C, 3C) and nn.Linear(C, C)).
    w_qkv = jax.random.normal(kw1, (C, 3 * C), dtype=jnp.float32) * 0.1
    b_qkv = jax.random.normal(kb1, (3 * C,), dtype=jnp.float32) * 0.1
    w_proj = jax.random.normal(kw2, (C, C), dtype=jnp.float32) * 0.1
    b_proj = jax.random.normal(kb2, (C,), dtype=jnp.float32) * 0.1

    out = attention_forward(x, w_qkv, b_qkv, w_proj, b_proj, scale)
    out = jax.block_until_ready(out)

    ref = _reference(x, w_qkv, b_qkv, w_proj, b_proj, scale)
    assert out.shape == (B, N, C)
    # bf16 MXU operands + approx reciprocal in the softmax -> bf16-level tolerance
    # against the pure-f32 reference.
    assert jnp.allclose(out, ref, atol=5e-2, rtol=5e-2), "mismatch vs reference"

    print("KERNEL_OK")
</pallas_src>

<mosaic_0001>
module attributes {stable_mosaic.version = 11 : i64} {
  func.func @_fused_attn_kernel(%arg0: i32, %arg1: memref<2x128x64xbf16, #tpu.memory_space<vmem>>, %arg2: memref<64x192xbf16, #tpu.memory_space<vmem>>, %arg3: memref<1x192xf32, #tpu.memory_space<vmem>>, %arg4: memref<64x64xbf16, #tpu.memory_space<vmem>>, %arg5: memref<1x128xf32, #tpu.memory_space<vmem>>, %arg6: memref<2x64x128xf32, #tpu.memory_space<vmem>>) attributes {dimension_semantics = [#tpu.dimension_semantics<parallel>], iteration_bounds = array<i64: 2>, scalar_prefetch = 0 : i64, scratch_operands = 0 : i64, tpu.core_type = #tpu.core_type<tc>, window_params = [{transform_indices = @transform_0, window_bounds = array<i64: 2, 128, 64>}, {pipeline_mode = #tpu.pipeline_mode<synchronous>, transform_indices = @transform_1, window_bounds = array<i64: 64, 192>}, {pipeline_mode = #tpu.pipeline_mode<synchronous>, transform_indices = @transform_2, window_bounds = array<i64: 1, 192>}, {pipeline_mode = #tpu.pipeline_mode<synchronous>, transform_indices = @transform_3, window_bounds = array<i64: 64, 64>}, {pipeline_mode = #tpu.pipeline_mode<synchronous>, transform_indices = @transform_4, window_bounds = array<i64: 1, 128>}, {transform_indices = @transform_5, window_bounds = array<i64: 2, 64, 128>}]} {
    %c0 = arith.constant 0 : index
    %c0_0 = arith.constant 0 : index
    %c0_1 = arith.constant 0 : index
    %0 = vector.load %arg1[%c0, %c0_0, %c0_1] : memref<2x128x64xbf16, #tpu.memory_space<vmem>>, vector<2x128x64xbf16>
    %1 = vector.shape_cast %0 : vector<2x128x64xbf16> to vector<256x64xbf16>
    %c0_2 = arith.constant 0 : index
    %c0_3 = arith.constant 0 : index
    %2 = vector.load %arg2[%c0_2, %c0_3] : memref<64x192xbf16, #tpu.memory_space<vmem>>, vector<64x192xbf16>
    %cst = arith.constant dense<0.000000e+00> : vector<256x192xf32>
    %3 = tpu.matmul %1, %2, %cst {dimension_numbers = #tpu.dot_dimension_numbers<[1], [0], [0], [1], [0, 0, 1, 1], [], []>} : vector<256x64xbf16>, vector<64x192xbf16>, vector<256x192xf32> -> vector<256x192xf32>
    %c0_4 = arith.constant 0 : index
    %c0_5 = arith.constant 0 : index
    %4 = vector.load %arg3[%c0_4, %c0_5] : memref<1x192xf32, #tpu.memory_space<vmem>>, vector<1x192xf32>
    %5 = vector.broadcast %4 : vector<1x192xf32> to vector<256x192xf32>
    %6 = arith.addf %3, %5 : vector<256x192xf32>
    %7 = vector.extract_strided_slice %6 {offsets = [0, 0], sizes = [128, 64], strides = [1, 1]} : vector<256x192xf32> to vector<128x64xf32>
    %8 = vector.extract_strided_slice %6 {offsets = [0, 64], sizes = [128, 64], strides = [1, 1]} : vector<256x192xf32> to vector<128x64xf32>
    %9 = vector.extract_strided_slice %6 {offsets = [0, 128], sizes = [128, 64], strides = [1, 1]} : vector<256x192xf32> to vector<128x64xf32>
    %10 = arith.truncf %7 : vector<128x64xf32> to vector<128x64xbf16>
    %11 = arith.truncf %8 : vector<128x64xf32> to vector<128x64xbf16>
    %cst_6 = arith.constant dense<0.000000e+00> : vector<128x128xf32>
    %12 = tpu.matmul %10, %11, %cst_6 {dimension_numbers = #tpu.dot_dimension_numbers<[1], [1], [0], [0], [0, 0, 1, 0], [], []>} : vector<128x64xbf16>, vector<128x64xbf16>, vector<128x128xf32> -> vector<128x128xf32>
    %cst_7 = arith.constant dense<0xFF800000> : vector<128xf32>
    %13 = vector.multi_reduction <maximumf>, %12, %cst_7 [1] : vector<128x128xf32> to vector<128xf32>
    %14 = vector.shape_cast %13 : vector<128xf32> to vector<128x1xf32>
    %15 = vector.broadcast %14 : vector<128x1xf32> to vector<128x128xf32>
    %16 = arith.subf %12, %15 : vector<128x128xf32>
    %17 = math.exp %16 : vector<128x128xf32>
    %cst_8 = arith.constant dense<0.000000e+00> : vector<128xf32>
    %18 = vector.multi_reduction <add>, %17, %cst_8 [1] : vector<128x128xf32> to vector<128xf32>
    %19 = vector.shape_cast %18 : vector<128xf32> to vector<128x1xf32>
    %20 = tpu.reciprocal %19 {approx = true} : vector<128x1xf32> -> vector<128x1xf32>
    %21 = vector.broadcast %20 : vector<128x1xf32> to vector<128x128xf32>
    %22 = arith.mulf %17, %21 : vector<128x128xf32>
    %23 = arith.truncf %22 : vector<128x128xf32> to vector<128x128xbf16>
    %24 = arith.truncf %9 : vector<128x64xf32> to vector<128x64xbf16>
    %cst_9 = arith.constant dense<0.000000e+00> : vector<128x64xf32>
    %25 = tpu.matmul %23, %24, %cst_9 {dimension_numbers = #tpu.dot_dimension_numbers<[1], [0], [0], [1], [0, 0, 1, 1], [], []>} : vector<128x128xbf16>, vector<128x64xbf16>, vector<128x64xf32> -> vector<128x64xf32>
    %26 = arith.truncf %25 : vector<128x64xf32> to vector<128x64xbf16>
    %27 = vector.extract_strided_slice %26 {offsets = [0, 0], sizes = [64, 64], strides = [1, 1]} : vector<128x64xbf16> to vector<64x64xbf16>
    %c0_10 = arith.constant 0 : index
    %c0_11 = arith.constant 0 : index
    %28 = vector.load %arg4[%c0_10, %c0_11] : memref<64x64xbf16, #tpu.memory_space<vmem>>, vector<64x64xbf16>
    %cst_12 = arith.constant dense<0.000000e+00> : vector<64x64xf32>
    %29 = tpu.matmul %27, %28, %cst_12 {dimension_numbers = #tpu.dot_dimension_numbers<[0], [0], [1], [1], [0, 1, 1, 1], [], []>} : vector<64x64xbf16>, vector<64x64xbf16>, vector<64x64xf32> -> vector<64x64xf32>
    %30 = vector.extract_strided_slice %26 {offsets = [64, 0], sizes = [64, 64], strides = [1, 1]} : vector<128x64xbf16> to vector<64x64xbf16>
    %c0_13 = arith.constant 0 : index
    %c0_14 = arith.constant 0 : index
    %31 = vector.load %arg4[%c0_13, %c0_14] : memref<64x64xbf16, #tpu.memory_space<vmem>>, vector<64x64xbf16>
    %cst_15 = arith.constant dense<0.000000e+00> : vector<64x64xf32>
    %32 = tpu.matmul %30, %31, %cst_15 {dimension_numbers = #tpu.dot_dimension_numbers<[0], [0], [1], [1], [0, 1, 1, 1], [], []>} : vector<64x64xbf16>, vector<64x64xbf16>, vector<64x64xf32> -> vector<64x64xf32>
    %33 = tpu.concatenate %29, %32 in 1 : vector<64x64xf32>, vector<64x64xf32> -> vector<64x128xf32>
    %c0_16 = arith.constant 0 : index
    %c0_17 = arith.constant 0 : index
    %34 = vector.load %arg5[%c0_16, %c0_17] : memref<1x128xf32, #tpu.memory_space<vmem>>, vector<1x128xf32>
    %35 = vector.broadcast %34 : vector<1x128xf32> to vector<64x128xf32>
    %36 = arith.addf %33, %35 : vector<64x128xf32>
    %c0_18 = arith.constant 0 : index
    %c0_19 = arith.constant 0 : index
    %c0_20 = arith.constant 0 : index
    %37 = vector.load %arg6[%c0_18, %c0_19, %c0_20] : memref<2x64x128xf32, #tpu.memory_space<vmem>>, vector<1x64x128xf32>
    %38 = vector.shape_cast %37 : vector<1x64x128xf32> to vector<64x128xf32>
    %39 = vector.shape_cast %36 : vector<64x128xf32> to vector<1x64x128xf32>
    tpu.vector_store %arg6[%c0_18, %c0_19, %c0_20], %39 {strides = array<i32>} : memref<2x64x128xf32, #tpu.memory_space<vmem>>, vector<1x64x128xf32>,
    %40 = vector.extract_strided_slice %6 {offsets = [128, 0], sizes = [128, 64], strides = [1, 1]} : vector<256x192xf32> to vector<128x64xf32>
    %41 = vector.extract_strided_slice %6 {offsets = [128, 64], sizes = [128, 64], strides = [1, 1]} : vector<256x192xf32> to vector<128x64xf32>
    %42 = vector.extract_strided_slice %6 {offsets = [128, 128], sizes = [128, 64], strides = [1, 1]} : vector<256x192xf32> to vector<128x64xf32>
    %43 = arith.truncf %40 : vector<128x64xf32> to vector<128x64xbf16>
    %44 = arith.truncf %41 : vector<128x64xf32> to vector<128x64xbf16>
    %cst_21 = arith.constant dense<0.000000e+00> : vector<128x128xf32>
    %45 = tpu.matmul %43, %44, %cst_21 {dimension_numbers = #tpu.dot_dimension_numbers<[1], [1], [0], [0], [0, 0, 1, 0], [], []>} : vector<128x64xbf16>, vector<128x64xbf16>, vector<128x128xf32> -> vector<128x128xf32>
    %cst_22 = arith.constant dense<0xFF800000> : vector<128xf32>
    %46 = vector.multi_reduction <maximumf>, %45, %cst_22 [1] : vector<128x128xf32> to vector<128xf32>
    %47 = vector.shape_cast %46 : vector<128xf32> to vector<128x1xf32>
    %48 = vector.broadcast %47 : vector<128x1xf32> to vector<128x128xf32>
    %49 = arith.subf %45, %48 : vector<128x128xf32>
    %50 = math.exp %49 : vector<128x128xf32>
    %cst_23 = arith.constant dense<0.000000e+00> : vector<128xf32>
    %51 = vector.multi_reduction <add>, %50, %cst_23 [1] : vector<128x128xf32> to vector<128xf32>
    %52 = vector.shape_cast %51 : vector<128xf32> to vector<128x1xf32>
    %53 = tpu.reciprocal %52 {approx = true} : vector<128x1xf32> -> vector<128x1xf32>
    %54 = vector.broadcast %53 : vector<128x1xf32> to vector<128x128xf32>
    %55 = arith.mulf %50, %54 : vector<128x128xf32>
    %56 = arith.truncf %55 : vector<128x128xf32> to vector<128x128xbf16>
    %57 = arith.truncf %42 : vector<128x64xf32> to vector<128x64xbf16>
    %cst_24 = arith.constant dense<0.000000e+00> : vector<128x64xf32>
    %58 = tpu.matmul %56, %57, %cst_24 {dimension_numbers = #tpu.dot_dimension_numbers<[1], [0], [0], [1], [0, 0, 1, 1], [], []>} : vector<128x128xbf16>, vector<128x64xbf16>, vector<128x64xf32> -> vector<128x64xf32>
    %59 = arith.truncf %58 : vector<128x64xf32> to vector<128x64xbf16>
    %60 = vector.extract_strided_slice %59 {offsets = [0, 0], sizes = [64, 64], strides = [1, 1]} : vector<128x64xbf16> to vector<64x64xbf16>
    %c0_25 = arith.constant 0 : index
    %c0_26 = arith.constant 0 : index
    %61 = vector.load %arg4[%c0_25, %c0_26] : memref<64x64xbf16, #tpu.memory_space<vmem>>, vector<64x64xbf16>
    %cst_27 = arith.constant dense<0.000000e+00> : vector<64x64xf32>
    %62 = tpu.matmul %60, %61, %cst_27 {dimension_numbers = #tpu.dot_dimension_numbers<[0], [0], [1], [1], [0, 1, 1, 1], [], []>} : vector<64x64xbf16>, vector<64x64xbf16>, vector<64x64xf32> -> vector<64x64xf32>
    %63 = vector.extract_strided_slice %59 {offsets = [64, 0], sizes = [64, 64], strides = [1, 1]} : vector<128x64xbf16> to vector<64x64xbf16>
    %c0_28 = arith.constant 0 : index
    %c0_29 = arith.constant 0 : index
    %64 = vector.load %arg4[%c0_28, %c0_29] : memref<64x64xbf16, #tpu.memory_space<vmem>>, vector<64x64xbf16>
    %cst_30 = arith.constant dense<0.000000e+00> : vector<64x64xf32>
    %65 = tpu.matmul %63, %64, %cst_30 {dimension_numbers = #tpu.dot_dimension_numbers<[0], [0], [1], [1], [0, 1, 1, 1], [], []>} : vector<64x64xbf16>, vector<64x64xbf16>, vector<64x64xf32> -> vector<64x64xf32>
    %66 = tpu.concatenate %62, %65 in 1 : vector<64x64xf32>, vector<64x64xf32> -> vector<64x128xf32>
    %c0_31 = arith.constant 0 : index
    %c0_32 = arith.constant 0 : index
    %67 = vector.load %arg5[%c0_31, %c0_32] : memref<1x128xf32, #tpu.memory_space<vmem>>, vector<1x128xf32>
    %68 = vector.broadcast %67 : vector<1x128xf32> to vector<64x128xf32>
    %69 = arith.addf %66, %68 : vector<64x128xf32>
    %c1 = arith.constant 1 : index
    %c0_33 = arith.constant 0 : index
    %c0_34 = arith.constant 0 : index
    %70 = vector.load %arg6[%c1, %c0_33, %c0_34] : memref<2x64x128xf32, #tpu.memory_space<vmem>>, vector<1x64x128xf32>
    %71 = vector.shape_cast %70 : vector<1x64x128xf32> to vector<64x128xf32>
    %72 = vector.shape_cast %69 : vector<64x128xf32> to vector<1x64x128xf32>
    tpu.vector_store %arg6[%c1, %c0_33, %c0_34], %72 {strides = array<i32>} : memref<2x64x128xf32, #tpu.memory_space<vmem>>, vector<1x64x128xf32>,
    return
  }
  func.func @transform_0(%arg0: i32) -> (i32, i32, i32) {
    %c0_i32 = arith.constant 0 : i32
    %c0_i32_0 = arith.constant 0 : i32
    %c0_i32_1 = arith.constant 0 : i32
    return %arg0, %c0_i32, %c0_i32_0 : i32, i32, i32
  }
  func.func @transform_1(%arg0: i32) -> (i32, i32) {
    %c0_i32 = arith.constant 0 : i32
    %c0_i32_0 = arith.constant 0 : i32
    %c0_i32_1 = arith.constant 0 : i32
    return %c0_i32, %c0_i32_0 : i32, i32
  }
  func.func @transform_2(%arg0: i32) -> (i32, i32) {
    %c0_i32 = arith.constant 0 : i32
    %c0_i32_0 = arith.constant 0 : i32
    %c0_i32_1 = arith.constant 0 : i32
    return %c0_i32, %c0_i32_0 : i32, i32
  }
  func.func @transform_3(%arg0: i32) -> (i32, i32) {
    %c0_i32 = arith.constant 0 : i32
    %c0_i32_0 = arith.constant 0 : i32
    %c0_i32_1 = arith.constant 0 : i32
    return %c0_i32, %c0_i32_0 : i32, i32
  }
  func.func @transform_4(%arg0: i32) -> (i32, i32) {
    %c0_i32 = arith.constant 0 : i32
    %c0_i32_0 = arith.constant 0 : i32
    %c0_i32_1 = arith.constant 0 : i32
    return %c0_i32, %c0_i32_0 : i32, i32
  }
  func.func @transform_5(%arg0: i32) -> (i32, i32, i32) {
    %c0_i32 = arith.constant 0 : i32
    %c0_i32_0 = arith.constant 0 : i32
    %c0_i32_1 = arith.constant 0 : i32
    return %arg0, %c0_i32, %c0_i32_0 : i32, i32, i32
  }
}

</mosaic_0001>

<bundles_post_ra>
// kernel: tpu_custom_call.1
= control target key start
LH: loop header
LB: loop body
LE: loop exit
PB: predicated region body
PF: predicated region fallthrough
CT: control target
= control target key end

     0   :  { %10 = vsyncpa [#allocation3], 0  ;;  %s3720_s0 = inlined_call_operand.vmem [shape: bf16[4,128,64], index: 0, kind: input, shape index: {}]   ;;  %s3721_s1 = inlined_call_operand.vmem [shape: bf16[64,192], index: 1, kind: input, shape index: {}]   ;;  %s3722_s2 = inlined_call_operand.vmem [shape: f32[1,192], index: 2, kind: input, shape index: {}]   ;;  %s3723_s3 = inlined_call_operand.vmem [shape: bf16[64,64], index: 3, kind: input, shape index: {}]   ;;  %s3724_s4 = inlined_call_operand.vmem [shape: f32[1,128], index: 4, kind: input, shape index: {}]   ;;  %s3725_s5 = inlined_call_operand.hbm [shape: f32[4,64,128], index: 5, kind: output, shape index: {}]  }
   0x1   :  { %12 = vsyncpa [#allocation3 + $0x1], 0  ;;  %s2901_s18 = smov 0   ;;  %s2903_s19 = smov 0  }
   0x2   :  { %s2905_s20 = smov 0   ;;  %s2907_s21 = smov 0  }
   0x3 LB: > { %s2922_s22 = sadd.s32 4294967295, %s2864_s21   ;;  %s2168_s23 = sadd.s32 4294967294, %s2864_s21   ;;  %s2864_s21 = sphi %s2907_s21, %s3731_s21   ;;  %s2860_s20 = sphi %s2905_s20, %s3730_s20   ;;  %s2856_s19 = sphi %s2903_s19, %s3729_s19   ;;  %s2852_s18 = sphi %s2901_s18, %s3728_s18  }
   0x4   : > { %s2926_s24 = sadd.s32 1, %s2864_s21   ;;  %s135_s25 = sadd.s32 1, %s2860_s20 }
   0x5   : > { %s132_s26 = ssub.s32 %s2864_s21, %s2926_s24  ;;  %p145_p0 = scmp.ne.s32.totalorder %s2860_s20, %s2856_s19 }
   0x6   : > { %p133_p1 = scmp.eq.s32.totalorder %s132_s26, 0  ;;  %p146_p2 = scmp.eq.s32.totalorder %s2922_s22, 1 }
   0x7   : > { %p151_p3 = scmp.ne.s32.totalorder %s2856_s19, %s2852_s18  ;;  %p152_p4 = scmp.eq.s32.totalorder %s2168_s23, 1 }
   0x8   : > { %s2937_s27 = scalar_select %p133_p1, %s2860_s20, %s135_s25  }
   0x9   : > { %p2939_p5 = por %p146_p2, %p145_p0  ;;  %p2943_p6 = por %p152_p4, %p151_p3 }
   0xa   : > { %p2171_p7 = scmp.ge.s32.totalorder %s2864_s21, 1  ;;  %p192_p8 = scmp.lt.s32.totalorder %s2864_s21, 3 }
   0xc   : > { %p193_p9 = pnand %p2171_p7, %p192_p8 }
   0xd   : > { %v2638_v0 = vld [vmem:[%s3721_s1 + $0x4] ss:$8 sps:$4 sm:$0xff] (!%p193_p9)   ;;  %s2173_s7 = sshll.u32 (!%p193_p9), %s2922_s22, 1  ;;  %v2640_v1 = vld [vmem:[%s3721_s1] ss:$8 sps:$4 sm:$0xff] (!%p193_p9)   ;;  %v2866_v2 = vmov (!%p193_p9), 0   ;;  %v272_v17 = vlaneseq (!%p193_p9) }
   0xe   : > { %196 = sbr.rel (%p193_p9) target bundleno = 2622 (0xa3e), region = 40  ;;  %483 = vmatprep.mubr.bf16.mxu0 (!%p193_p9), %v2866_v2  ;;  %p222_p10 = scmp.lt.s32.totalorder (!%p193_p9), %s2173_s7, 3  ;;  %451 = vmatprep.subr.bf16.mxu0 (!%p193_p9), %v2638_v0  ;;  %v2641_v3 = vld [vmem:[%s3721_s1 + $0x14] ss:$8 sps:$4 sm:$0xff] (!%p193_p9)   ;;  %v2643_v4 = vld [vmem:[%s3721_s1 + $0x10] ss:$8 sps:$4 sm:$0xff] (!%p193_p9)  }
   0xf   : > { %452 = vmatpush1.bf16.msra.mxu0 (!%p193_p9), %v2640_v1  ;;  %v2644_v5 = vld [vmem:[%s3721_s1 + $0x24] ss:$8 sps:$4 sm:$0xff] (!%p193_p9)   ;;  %v2646_v6 = vld [vmem:[%s3721_s1 + $0x20] ss:$8 sps:$4 sm:$0xff] (!%p193_p9)   ;;  %v2647_v7 = vld [vmem:[%s3721_s1 + $0x34] ss:$8 sps:$4 sm:$0xff] (!%p193_p9)  }
  0x10   : > { %453 = vmatprep.subr.bf16.mxu0 (!%p193_p9), %v2641_v3  ;;  %v2649_v8 = vld [vmem:[%s3721_s1 + $0x30] ss:$8 sps:$4 sm:$0xff] (!%p193_p9)   ;;  %vm402_vm0 = vcmask (!%p193_p9), 523264   ;;  %v273_v18 = vshrl.u32 (!%p193_p9), %v272_v17, 7  ;;  %v270_v20 = vld [vmem:[%s3722_s2] sm:$0x3] (!%p193_p9) }
  0x11   : > { %s2867_s12 = smov (!%p193_p9), 64   ;;  %s218_s14 = sand.u32 (!%p193_p9), 1, %s2856_s19  }
  0x12   : > { %v274_v19 = vsub.s32 (!%p193_p9), 0, %v273_v18  ;;  %v278_v21 = vsub.s32 (!%p193_p9), 1, %v273_v18  ;;  %s2172_s15 = sshll.u32 (!%p193_p9), %s218_s14, 7 }
  0x13   : > { %454 = vmatpush1.bf16.msra.mxu0 (!%p193_p9), %v2643_v4  ;;  %s3605_s23 = scalar_lea.vmem (!%p193_p9), [#allocation2], %s2172_s15 }
  0x14   : > { %455 = vmatprep.subr.bf16.mxu0 (!%p193_p9), %v2644_v5  ;;  %v3007_v22 = vrot.slane (!%p193_p9), %v270_v20, %v274_v19  ;;  %v3009_v24 = vrot.slane (!%p193_p9), %v270_v20, %v278_v21 }
  0x15   : > { %s3733_s7 = smov (!%p222_p10, %s2173_s7), 3 }
  0x16   : > { %s2272_s16 = sshll.u32 %s3733_s7, 6  ;;  %s2868_s7 = smov [#allocation2]  }
  0x17   : > { %s2969_s25 = scalar_lea.vmem %s3720_s0, %s2272_s16  ;;  %456 = vmatpush1.bf16.msra.mxu0 %v2646_v6  ;;  %s2806_s9 = sshll.u32 %s2868_s7, 4  ;;  %s2807_s9 = int_to_ptr.vmem [resolvable:$false] %s2806_s9 }
  0x18   : > { %457 = vmatprep.subr.bf16.mxu0 %v2647_v7  ;;  %v2650_v9 = vld [vmem:[%s2969_s25] sm:$0xff]   ;;  %v2651_v10 = vld [vmem:[%s2969_s25 + $0x8] sm:$0xff]   ;;  %v2652_v11 = vld [vmem:[%s2969_s25 + $0x10] sm:$0xff]   ;;  %s2808_s10 = scalar_lea.vmem %s2807_s9, 4096 }
  0x19   : > { %v2653_v12 = vld [vmem:[%s2969_s25 + $0x18] sm:$0xff]   ;;  %v2654_v13 = vld [vmem:[%s2969_s25 + $0x20] sm:$0xff]   ;;  %v2655_v14 = vld [vmem:[%s2969_s25 + $0x28] sm:$0xff]  }
  0x1a   : > { %v2656_v15 = vld [vmem:[%s2969_s25 + $0x30] sm:$0xff]   ;;  %v2657_v16 = vld [vmem:[%s2969_s25 + $0x38] sm:$0xff]  }
  0x1b   : > { %458 = vmatpush1.bf16.msra.mxu0 %v2649_v8 }
  0x1e   : > { %2200 = vmatmul.mubr.msk.bf16.vlgmr.msra.gmra.mrb[0].mxu0 %vm402_vm0, %v2650_v9 }
  0x1f   : > { %493 = vmatprep.mubr.bf16.mxu0 %v2866_v2 }
  0x26   : > { %2201 = vmatmul.mubr.msk.bf16.gmra.mrb[4].mxu0 %vm402_vm0, %v2651_v10 }
  0x27   : > { %503 = vmatprep.mubr.bf16.mxu0 %v2866_v2 }
  0x2e   : > { %2202 = vmatmul.mubr.msk.bf16.gmra.mrb[8].mxu0 %vm402_vm0, %v2652_v11 }
  0x2f   : > { %513 = vmatprep.mubr.bf16.mxu0 %v2866_v2 }
  0x36   : > { %2203 = vmatmul.mubr.msk.bf16.gmra.mrb[12].mxu0 %vm402_vm0, %v2653_v12 }
  0x37   : > { %523 = vmatprep.mubr.bf16.mxu0 %v2866_v2 }
  0x3e   : > { %2204 = vmatmul.mubr.msk.bf16.gmra.mrb[16].mxu0 %vm402_vm0, %v2654_v13 }
  0x3f   : > { %533 = vmatprep.mubr.bf16.mxu0 %v2866_v2 }
  0x46   : > { %2205 = vmatmul.mubr.msk.bf16.gmra.mrb[20].mxu0 %vm402_vm0, %v2655_v14 }
  0x47   : > { %543 = vmatprep.mubr.bf16.mxu0 %v2866_v2 }
  0x4e   : > { %2206 = vmatmul.mubr.msk.bf16.gmra.mrb[24].mxu0 %vm402_vm0, %v2656_v15 }
  0x4f   : > { %553 = vmatprep.mubr.bf16.mxu0 %v2866_v2 }
  0x56   : > { %2207 = vmatmul.mubr.msk.bf16.gmra.mrb[28].mxu0 %vm402_vm0, %v2657_v16 }
  0x57   : > { %563 = vmatprep.mubr.bf16.mxu0 %v2866_v2 }
  0xf1   : > { %v485_v23 = vpop.f32.mrb[0].mxu0 }
  0xf2   : > { %v487_v25 = vpop.f32.mrb[1].mxu0  ;;  %v486_v27 = vadd.f32 %v485_v23, %v3007_v22 }
  0xf3   : > { %v489_v26 = vpop.f32.mrb[2].mxu0  ;;  %v488_v30 = vadd.f32 %v487_v25, %v3009_v24 }
  0xf4   : > { %v490_v28 = vadd.f32 %v489_v26, %v3007_v22  ;;  %v491_v29 = vpop.f32.mrb[3].mxu0 }
  0xf5   : > { %v492_v31 = vadd.f32 %v491_v29, %v3009_v24 }
  0xf6   : > { %v644_v32 = vpack.c.bf16 %v490_v28, %v486_v27 }
  0xf7   : > { %v3015_v33 = vpack.c.bf16 %v492_v31, %v488_v30 }
  0xf8   : > { %660 = vrot.lane.b32.xlu0 %v644_v32, %s2867_s12  ;;  %2387 = vmatprep.mubr.msk.bf16.mxu1 %vm402_vm0, %v644_v32 }
  0xf9   : > { %v495_v34 = vpop.f32.mrb[4].mxu0 }
  0xfa   : > { %v497_v35 = vpop.f32.mrb[5].mxu0  ;;  %v496_v37 = vadd.f32 %v495_v34, %v3007_v22 }
  0xfb   : > { %v499_v36 = vpop.f32.mrb[6].mxu0  ;;  %v498_v40 = vadd.f32 %v497_v35, %v3009_v24 }
  0xfc   : > { %v500_v38 = vadd.f32 %v499_v36, %v3007_v22  ;;  %v501_v39 = vpop.f32.mrb[7].mxu0 }
  0xfd   : > { %v502_v41 = vadd.f32 %v501_v39, %v3009_v24 }
  0xfe   : > { %v3023_v42 = vpack.c.bf16 %v500_v38, %v496_v37 }
  0xff   : > { %v3025_v43 = vpack.c.bf16 %v502_v41, %v498_v40 }
 0x100   : > { %662 = vrot.lane.b32.xlu0 %v3023_v42, %s2867_s12 }
 0x101   : > { %v505_v44 = vpop.f32.mrb[8].mxu0 }
 0x102   : > { %v507_v45 = vpop.f32.mrb[9].mxu0  ;;  %v506_v47 = vadd.f32 %v505_v44, %v3007_v22 }
 0x103   : > { %v509_v46 = vpop.f32.mrb[10].mxu0  ;;  %v508_v50 = vadd.f32 %v507_v45, %v3009_v24 }
 0x104   : > { %v510_v48 = vadd.f32 %v509_v46, %v3007_v22  ;;  %v511_v49 = vpop.f32.mrb[11].mxu0 }
 0x105   : > { %v512_v51 = vadd.f32 %v511_v49, %v3009_v24 }
 0x106   : > { %v3033_v52 = vpack.c.bf16 %v510_v48, %v506_v47 }
 0x107   : > { %v3035_v53 = vpack.c.bf16 %v512_v51, %v508_v50 }
 0x108   : > { %664 = vrot.lane.b32.xlu1 %v3033_v52, %s2867_s12 }
 0x109   : > { %v515_v54 = vpop.f32.mrb[12].mxu0 }
 0x10a   : > { %v517_v55 = vpop.f32.mrb[13].mxu0  ;;  %v516_v57 = vadd.f32 %v515_v54, %v3007_v22 }
 0x10b   : > { %v519_v56 = vpop.f32.mrb[14].mxu0  ;;  %v518_v60 = vadd.f32 %v517_v55, %v3009_v24 }
 0x10c   : > { %v520_v58 = vadd.f32 %v519_v56, %v3007_v22  ;;  %v521_v59 = vpop.f32.mrb[15].mxu0 }
 0x10d   : > { %v522_v61 = vadd.f32 %v521_v59, %v3009_v24 }
 0x10e   : > { %v3043_v62 = vpack.c.bf16 %v520_v58, %v516_v57 }
 0x10f   : > { %v3045_v63 = vpack.c.bf16 %v522_v61, %v518_v60 }
 0x110   : > { %666 = vrot.lane.b32.xlu1 %v3043_v62, %s2867_s12 }
 0x111   : > { %v525_v0 = vpop.f32.mrb[16].mxu0 }
 0x112   : > { %v527_v1 = vpop.f32.mrb[17].mxu0  ;;  %v526_v4 = vadd.f32 %v525_v0, %v3007_v22 }
 0x113   : > { %v529_v3 = vpop.f32.mrb[18].mxu0  ;;  %v528_v7 = vadd.f32 %v527_v1, %v3009_v24 }
 0x114   : > { %v530_v5 = vadd.f32 %v529_v3, %v3007_v22  ;;  %v531_v6 = vpop.f32.mrb[19].mxu0 }
 0x115   : > { %v532_v8 = vadd.f32 %v531_v6, %v3009_v24 }
 0x116   : > { %v3053_v9 = vpack.c.bf16 %v530_v5, %v526_v4 }
 0x117   : > { %v3055_v10 = vpack.c.bf16 %v532_v8, %v528_v7 }
 0x118   : > { %668 = vrot.lane.b32.xlu0 %v3053_v9, %s2867_s12 }
 0x119   : > { %v535_v11 = vpop.f32.mrb[20].mxu0 }
 0x11a   : > { %v537_v12 = vpop.f32.mrb[21].mxu0  ;;  %v536_v14 = vadd.f32 %v535_v11, %v3007_v22 }
 0x11b   : > { %v539_v13 = vpop.f32.mrb[22].mxu0  ;;  %v538_v17 = vadd.f32 %v537_v12, %v3009_v24  ;;  %v2658_v12 = vld [vmem:[%s2969_s25 + $0x40] sm:$0xff]  }
 0x11c   : > { %v540_v15 = vadd.f32 %v539_v13, %v3007_v22  ;;  %v541_v16 = vpop.f32.mrb[23].mxu0  ;;  %2208 = vmatmul.mubr.msk.bf16.gmra.mrb[32].mxu0 %vm402_vm0, %v2658_v12  ;;  %v2659_v13 = vld [vmem:[%s2969_s25 + $0x48] sm:$0xff]  }
 0x11d   : > { %v542_v18 = vadd.f32 %v541_v16, %v3009_v24  ;;  %573 = vmatprep.mubr.bf16.mxu0 %v2866_v2 }
 0x11e   : > { %v3063_v19 = vpack.c.bf16 %v540_v15, %v536_v14  ;;  %v2660_v14 = vld [vmem:[%s2969_s25 + $0x50] sm:$0xff]  }
 0x11f   : > { %v3065_v20 = vpack.c.bf16 %v542_v18, %v538_v17 }
 0x120   : > { %670 = vrot.lane.b32.xlu1 %v3063_v19, %s2867_s12 }
 0x121   : > { %v545_v21 = vpop.f32.mrb[24].mxu0 }
 0x122   : > { %v547_v23 = vpop.f32.mrb[25].mxu0  ;;  %v546_v26 = vadd.f32 %v545_v21, %v3007_v22 }
 0x123   : > { %v549_v25 = vpop.f32.mrb[26].mxu0  ;;  %v548_v29 = vadd.f32 %v547_v23, %v3009_v24 }
 0x124   : > { %v550_v27 = vadd.f32 %v549_v25, %v3007_v22  ;;  %v551_v28 = vpop.f32.mrb[27].mxu0  ;;  %2209 = vmatmul.mubr.msk.bf16.gmra.mrb[36].mxu0 %vm402_vm0, %v2659_v13 }
 0x125   : > { %v552_v30 = vadd.f32 %v551_v28, %v3009_v24  ;;  %583 = vmatprep.mubr.bf16.mxu0 %v2866_v2 }
 0x126   : > { %v650_v31 = vpack.c.bf16 %v550_v27, %v546_v26 }
 0x127   : > { %v3073_v32 = vpack.c.bf16 %v552_v30, %v548_v29 }
 0x128   : > { %672 = vrot.lane.b32.xlu0 %v650_v31, %s2867_s12 }
 0x129   : > { %v555_v34 = vpop.f32.mrb[28].mxu0 }
 0x12a   : > { %v557_v35 = vpop.f32.mrb[29].mxu0  ;;  %v556_v37 = vadd.f32 %v555_v34, %v3007_v22 }
 0x12b   : > { %v559_v36 = vpop.f32.mrb[30].mxu0  ;;  %v558_v40 = vadd.f32 %v557_v35, %v3009_v24 }
 0x12c   : > { %v560_v38 = vadd.f32 %v559_v36, %v3007_v22  ;;  %v561_v39 = vpop.f32.mrb[31].mxu0  ;;  %2210 = vmatmul.mubr.msk.bf16.gmra.mrb[40].mxu0 %vm402_vm0, %v2660_v14 }
 0x12d   : > { %v562_v41 = vadd.f32 %v561_v39, %v3009_v24  ;;  %593 = vmatprep.mubr.bf16.mxu0 %v2866_v2 }
 0x12e   : > { %v651_v44 = vpack.c.bf16 %v560_v38, %v556_v37 }
 0x12f   : > { %v980_v45 = vpack.c.bf16 %v562_v41, %v558_v40 }
 0x130   : > { %674 = vrot.lane.b32.xlu1 %v651_v44, %s2867_s12 }
 0x16a   : > { %v661_v46 = vpop.permute.xlu0 %660 }
 0x16b   : > { %2579 = vmatprep.subr.msk.bf16.mxu1 %vm402_vm0, %v661_v46  ;;  %v701_v47 = vsel %vm402_vm0, %v661_v46, 0 }
 0x16c   : > { %2372 = vmatpush3.bf16.xpose.msra.mxu1 %v701_v47 }
 0x172   : > { %v663_v48 = vpop.permute.xlu0 %662 }
 0x173   : > { %2580 = vmatprep.subr.msk.bf16.mxu1 %vm402_vm0, %v663_v48  ;;  %v704_v49 = vsel %vm402_vm0, %v663_v48, 0 }
 0x174   : > { %2374 = vmatpush3.bf16.xpose.msra.mxu1 %v704_v49 }
 0x17a   : > { %v665_v50 = vpop.permute.xlu1 %664 }
 0x17b   : > { %2581 = vmatprep.subr.msk.bf16.mxu1 %vm402_vm0, %v665_v50  ;;  %v707_v51 = vsel %vm402_vm0, %v665_v50, 0 }
 0x17c   : > { %2376 = vmatpush3.bf16.xpose.msra.mxu1 %v707_v51 }
 0x182   : > { %v667_v54 = vpop.permute.xlu1 %666 }
 0x183   : > { %2582 = vmatprep.subr.msk.bf16.mxu1 %vm402_vm0, %v667_v54  ;;  %v710_v55 = vsel %vm402_vm0, %v667_v54, 0  ;;  %v2661_v54 = vld [vmem:[%s2969_s25 + $0x58] sm:$0xff]  }
 0x184   : > { %2378 = vmatpush3.bf16.xpose.msra.mxu1 %v710_v55  ;;  %2211 = vmatmul.mubr.msk.bf16.gmra.mrb[44].mxu0 %vm402_vm0, %v2661_v54  ;;  %v2662_v55 = vld [vmem:[%s2969_s25 + $0x60] sm:$0xff]  }
 0x185   : > { %603 = vmatprep.mubr.bf16.mxu0 %v2866_v2 }
 0x18a   : > { %v669_v56 = vpop.permute.xlu0 %668 }
 0x18b   : > { %2583 = vmatprep.subr.msk.bf16.mxu1 %vm402_vm0, %v669_v56  ;;  %v713_v57 = vsel %vm402_vm0, %v669_v56, 0  ;;  %v2663_v56 = vld [vmem:[%s2969_s25 + $0x68] sm:$0xff]  }
 0x18c   : > { %2380 = vmatpush3.bf16.xpose.msra.mxu1 %v713_v57  ;;  %2212 = vmatmul.mubr.msk.bf16.gmra.mrb[48].mxu0 %vm402_vm0, %v2662_v55  ;;  %v2666_v57 = vld [vmem:[%s3723_s3] sm:$0xff]  }
 0x18d   : > { %613 = vmatprep.mubr.bf16.mxu0 %v2866_v2  ;;  %2451 = vmatprep.subr.bf16.mxu0 %v2666_v57 }
 0x18e   : > { %2452 = vmatpush3.bf16.msra.mxu0 %v2666_v57 }
 0x192   : > { %v671_v58 = vpop.permute.xlu1 %670 }
 0x193   : > { %2584 = vmatprep.subr.msk.bf16.mxu1 %vm402_vm0, %v671_v58  ;;  %v716_v59 = vsel %vm402_vm0, %v671_v58, 0  ;;  %v2664_v58 = vld [vmem:[%s2969_s25 + $0x70] sm:$0xff]  }
 0x194   : > { %2382 = vmatpush3.bf16.xpose.msra.mxu1 %v716_v59  ;;  %2213 = vmatmul.mubr.msk.bf16.gmra.mrb[52].mxu0 %vm402_vm0, %v2663_v56  ;;  %v2665_v59 = vld [vmem:[%s2969_s25 + $0x78] sm:$0xff]   ;;  %s2106_s25 = sshll.u32 %s3605_s23, 4  ;;  %s3672_s25 = int_to_ptr.vmem [resolvable:$true] %s2106_s25 }
 0x195   : > { %623 = vmatprep.mubr.bf16.mxu0 %v2866_v2  ;;  %s2802_s8 = scalar_lea.vmem %s3672_s25, 2048  ;;  %p2809_p0 = scmp.lt.s32.totalorder %s3672_s25, %s2807_s9 }
 0x196   : > { %p2803_p11 = scmp.ne.s32.totalorder %s3672_s25, %s2802_s8  ;;  %p2810_p1 = scmp.lt.s32.totalorder %s2808_s10, %s2802_s8 }
 0x198   : > { %p2804_p12 = pnand %p2803_p11, %p2939_p5  ;;  %p2811_p2 = por %p2810_p1, %p2809_p0 }
 0x19a   : > { %v673_v60 = vpop.permute.xlu0 %672  ;;  %p2805_p13 = pneg %p2804_p12 }
 0x19b   : > { %2585 = vmatprep.subr.msk.bf16.mxu1 %vm402_vm0, %v673_v60  ;;  %v719_v61 = vsel %vm402_vm0, %v673_v60, 0 }
 0x19c   : > { %2384 = vmatpush3.bf16.xpose.msra.mxu1 %v719_v61  ;;  %2214 = vmatmul.mubr.msk.bf16.gmra.mrb[56].mxu0 %vm402_vm0, %v2664_v58  ;;  %v2667_v58 = vld [vmem:[%s3723_s3 + $0x8] sm:$0xff]   ;;  %p2812_p3 = pnand %p2811_p2, %p2805_p13 }
 0x19d   : > { %633 = vmatprep.mubr.bf16.mxu0 %v2866_v2  ;;  %2453 = vmatprep.subr.bf16.mxu0 %v2667_v58 }
 0x19e   : > { %2454 = vmatpush3.bf16.msra.mxu0 %v2667_v58 }
 0x1a2   : > { %v675_v0 = vpop.permute.xlu1 %674 }
 0x1a3   : > { %2586 = vmatprep.subr.msk.bf16.mxu1 %vm402_vm0, %v675_v0  ;;  %v722_v1 = vsel %vm402_vm0, %v675_v0, 0 }
 0x1a4   : > { %2386 = vmatpush3.bf16.xpose.msra.mxu1 %v722_v1  ;;  %2215 = vmatmul.mubr.msk.bf16.gmra.mrb[60].mxu0 %vm402_vm0, %v2665_v59 }
 0x1a5   : > { %2403 = vmatprep.subr.bf16.mxu1 %v3015_v33 }
 0x1ab   : > { %2388 = vmatmul.mubr.msk.bf16.vlgmr.msra.gmra.mrb[0].mxu1 %vm402_vm0, %v3023_v42 }
 0x1ac   : > { %2391 = vmatprep.mubr.msk.bf16.mxu1 %vm402_vm0, %v3033_v52  ;;  %2404 = vmatpush3.bf16.msra.mxu1 %v3015_v33 }
 0x1ad   : > { %2405 = vmatprep.subr.bf16.mxu1 %v3025_v43 }
 0x1b0   : > { %2406 = vmatpush3.bf16.msra.mxu1 %v3025_v43 }
 0x1b1   : > { %2407 = vmatprep.subr.bf16.mxu1 %v3035_v53 }
 0x1b3   : > { %2392 = vmatmul.mubr.msk.bf16.gmra.mrb[4].mxu1 %vm402_vm0, %v3043_v62 }
 0x1b4   : > { %2395 = vmatprep.mubr.msk.bf16.mxu1 %vm402_vm0, %v3053_v9  ;;  %2408 = vmatpush3.bf16.msra.mxu1 %v3035_v53 }
 0x1b5   : > { %2409 = vmatprep.subr.bf16.mxu1 %v3045_v63 }
 0x1b8   : > { %2410 = vmatpush3.bf16.msra.mxu1 %v3045_v63 }
 0x1b9   : > { %2411 = vmatprep.subr.bf16.mxu1 %v3055_v10 }
 0x1bb   : > { %2396 = vmatmul.mubr.msk.bf16.gmra.mrb[8].mxu1 %vm402_vm0, %v3063_v19 }
 0x1bc   : > { %2399 = vmatprep.mubr.msk.bf16.mxu1 %vm402_vm0, %v650_v31  ;;  %2412 = vmatpush3.bf16.msra.mxu1 %v3055_v10 }
 0x1bd   : > { %2413 = vmatprep.subr.bf16.mxu1 %v3065_v20 }
 0x1c0   : > { %2414 = vmatpush3.bf16.msra.mxu1 %v3065_v20 }
 0x1c1   : > { %2415 = vmatprep.subr.bf16.mxu1 %v3073_v32 }
 0x1c3   : > { %2400 = vmatmul.mubr.msk.bf16.gmra.mrb[12].mxu1 %vm402_vm0, %v651_v44 }
 0x1c4   : > { %2416 = vmatpush3.bf16.msra.mxu1 %v3073_v32 }
 0x1c5   : > { %2417 = vmatprep.subr.bf16.mxu1 %v980_v45 }
 0x1c8   : > { %2418 = vmatpush3.bf16.msra.mxu1 %v980_v45 }
 0x1c9   : > { %2435 = vmatprep.subr.bf16.mxu1 %v2666_v57 }
 0x1ef   : > { %v565_v59 = vpop.f32.mrb[32].mxu0 }
 0x27e   : > { %v2389_v33 = vpop.f32.mrb[0].mxu1 }
 0x27f   : > { %v758_v42 = vpop.f32.mrb[1].mxu1 }
 0x280   : > { %821 = vmax.xlane.f32.xlu0 %v758_v42  ;;  %v2390_v43 = vpop.f32.mrb[2].mxu1 }
 0x281   : > { %v761_v52 = vpop.f32.mrb[3].mxu1 }
 0x282   : > { %823 = vmax.xlane.f32.xlu1 %v761_v52 }
 0x284   : > { %825 = vmax.xlane.f32.xlu0 %v2389_v33 }
 0x286   : > { %v2393_v53 = vpop.f32.mrb[4].mxu1 }
 0x287   : > { %v774_v62 = vpop.f32.mrb[5].mxu1 }
 0x288   : > { %827 = vmax.xlane.f32.xlu0 %v2390_v43  ;;  %829 = vmax.xlane.f32.xlu1 %v774_v62  ;;  %v2394_v63 = vpop.f32.mrb[6].mxu1 }
 0x289   : > { %v777_v3 = vpop.f32.mrb[7].mxu1 }
 0x28c   : > { %833 = vmax.xlane.f32.xlu1 %v2393_v53  ;;  %831 = vmax.xlane.f32.xlu0 %v777_v3 }
 0x28e   : > { %v3123_v4 = vpop.f32.mrb[8].mxu1 }
 0x28f   : > { %v3125_v5 = vpop.f32.mrb[9].mxu1 }
 0x290   : > { %835 = vmax.xlane.f32.xlu0 %v2394_v63  ;;  %v3127_v6 = vpop.f32.mrb[10].mxu1 }
 0x291   : > { %v3129_v7 = vpop.f32.mrb[11].mxu1 }
 0x296   : > { %v3131_v8 = vpop.f32.mrb[12].mxu1 }
 0x297   : > { %v3133_v9 = vpop.f32.mrb[13].mxu1 }
 0x298   : > { %v3135_v10 = vpop.f32.mrb[14].mxu1 }
 0x299   : > { %v3137_v11 = vpop.f32.mrb[15].mxu1 }
 0x30d   : > { %v822_v15 = vpop.xlane.xlu0 %821 }
 0x30e   : > { %v853_v16 = vsub.f32 %v758_v42, %v822_v15 }
 0x30f   : > { %v824_v17 = vpop.xlane.xlu1 %823 }
 0x310   : > { %v869_v18 = vmul.f32 1.442695, %v853_v16  ;;  %v854_v19 = vsub.f32 %v761_v52, %v824_v17 }
 0x311   : > { %v826_v20 = vpop.xlane.xlu0 %825 }
 0x312   : > { %2674 = vpow2.f32 %v869_v18  ;;  %v871_v21 = vmul.f32 1.442695, %v854_v19  ;;  %v855_v23 = vsub.f32 %v2389_v33, %v826_v20 }
 0x314   : > { %2676 = vpow2.f32 %v871_v21  ;;  %v873_v25 = vmul.f32 1.442695, %v855_v23 }
 0x315   : > { %v828_v26 = vpop.xlane.xlu0 %827  ;;  %v830_v27 = vpop.xlane.xlu1 %829 }
 0x316   : > { %2678 = vpow2.f32 %v873_v25  ;;  %v856_v28 = vsub.f32 %v2390_v43, %v828_v26  ;;  %v857_v29 = vsub.f32 %v774_v62, %v830_v27 }
 0x318   : > { %v875_v30 = vmul.f32 1.442695, %v856_v28  ;;  %v877_v31 = vmul.f32 1.442695, %v857_v29 }
 0x319   : > { %v834_v32 = vpop.xlane.xlu1 %833  ;;  %v832_v34 = vpop.xlane.xlu0 %831 }
 0x31a   : > { %2680 = vpow2.f32 %v875_v30  ;;  %v859_v35 = vsub.f32 %v2393_v53, %v834_v32  ;;  %v858_v36 = vsub.f32 %v777_v3, %v832_v34 }
 0x31b   : > { %2682 = vpow2.f32 %v877_v31 }
 0x31c   : > { %v3148_v37 = vpop.eup %2674  ;;  %v881_v38 = vmul.f32 1.442695, %v859_v35  ;;  %v879_v39 = vmul.f32 1.442695, %v858_v36 }
 0x31d   : > { %901 = vadd.xlane.f32.xlu1 %v3148_v37  ;;  %v836_v40 = vpop.xlane.xlu0 %835 }
 0x31e   : > { %v2677_v41 = vpop.eup %2676  ;;  %2684 = vpow2.f32 %v881_v38  ;;  %v860_v44 = vsub.f32 %v2394_v63, %v836_v40 }
 0x31f   : > { %2686 = vpow2.f32 %v879_v39  ;;  %903 = vadd.xlane.f32.xlu0 %v2677_v41 }
 0x320   : > { %v3151_v45 = vpop.eup %2678  ;;  %v883_v46 = vmul.f32 1.442695, %v860_v44 }
 0x321   : > { %905 = vadd.xlane.f32.xlu1 %v3151_v45 }
 0x322   : > { %2688 = vpow2.f32 %v883_v46 }
 0x324   : > { %v2681_v47 = vpop.eup %2680 }
 0x325   : > { %v3154_v48 = vpop.eup %2682  ;;  %907 = vadd.xlane.f32.xlu0 %v2681_v47 }
 0x326   : > { %909 = vadd.xlane.f32.xlu1 %v3154_v48 }
 0x328   : > { %v3157_v49 = vpop.eup %2684 }
 0x329   : > { %v3159_v50 = vpop.eup %2686 }
 0x32a   : > { %913 = vadd.xlane.f32.xlu1 %v3157_v49  ;;  %911 = vadd.xlane.f32.xlu0 %v3159_v50 }
 0x32c   : > { %v3163_v51 = vpop.eup %2688 }
 0x32e   : > { %915 = vadd.xlane.f32.xlu0 %v3163_v51  ;;  %837 = vmax.xlane.f32.xlu1 %v3125_v5 }
 0x332   : > { %841 = vmax.xlane.f32.xlu1 %v3123_v4  ;;  %839 = vmax.xlane.f32.xlu0 %v3129_v7 }
 0x336   : > { %843 = vmax.xlane.f32.xlu0 %v3127_v6  ;;  %845 = vmax.xlane.f32.xlu1 %v3133_v9 }
 0x33a   : > { %849 = vmax.xlane.f32.xlu1 %v3131_v8  ;;  %847 = vmax.xlane.f32.xlu0 %v3137_v11 }
 0x33e   : > { %851 = vmax.xlane.f32.xlu0 %v3135_v10 }
 0x3aa   : > { %v902_v60 = vpop.xlane.xlu1 %901 }
 0x3ab   : > { %2690 = vrcp.f32 %v902_v60  ;;  %v567_v60 = vpop.f32.mrb[33].mxu0 }
 0x3ac   : > { %v904_v61 = vpop.xlane.xlu0 %903 }
 0x3ad   : > { %2692 = vrcp.f32 %v904_v61  ;;  %v2668_v61 = vld [vmem:[%s3723_s3 + $0x10] sm:$0xff]  }
 0x3ae   : > { %v906_v0 = vpop.xlane.xlu1 %905  ;;  %2455 = vmatprep.subr.bf16.mxu0 %v2668_v61 }
 0x3af   : > { %2694 = vrcp.f32 %v906_v0  ;;  %v566_v0 = vadd.f32 %v565_v59, %v3007_v22  ;;  %2456 = vmatpush3.bf16.msra.mxu0 %v2668_v61 }
 0x3b2   : > { %v908_v1 = vpop.xlane.xlu0 %907 }
 0x3b3   : > { %v910_v33 = vpop.xlane.xlu1 %909  ;;  %2696 = vrcp.f32 %v908_v1  ;;  %v568_v1 = vadd.f32 %v567_v60, %v3009_v24 }
 0x3b4   : > { %2698 = vrcp.f32 %v910_v33  ;;  %v569_v33 = vpop.f32.mrb[34].mxu0 }
 0x3b5   : > { %v2691_v42 = vpop.eup %2690 }
 0x3b6   : > { %v949_v62 = vmul.f32 %v2691_v42, %v3148_v37  ;;  %v570_v42 = vadd.f32 %v569_v33, %v3007_v22 }
 0x3b7   : > { %v2693_v43 = vpop.eup %2692  ;;  %v914_v52 = vpop.xlane.xlu1 %913 }
 0x3b8   : > { %v912_v53 = vpop.xlane.xlu0 %911  ;;  %v950_v2 = vmul.f32 %v2693_v43, %v2677_v41  ;;  %v571_v43 = vpop.f32.mrb[35].mxu0 }
 0x3b9   : > { %2700 = vrcp.f32 %v912_v53  ;;  %v2695_v3 = vpop.eup %2694  ;;  %v2669_v53 = vld [vmem:[%s3723_s3 + $0x18] sm:$0xff]  }
 0x3ba   : > { %2702 = vrcp.f32 %v914_v52  ;;  %v965_v63 = vpack.c.bf16 %v950_v2, %v949_v62  ;;  %v951_v15 = vmul.f32 %v2695_v3, %v3151_v45  ;;  %v572_v52 = vadd.f32 %v571_v43, %v3009_v24  ;;  %2457 = vmatprep.subr.bf16.mxu0 %v2669_v53 }
 0x3bb   : > { %v838_v13 = vpop.xlane.xlu1 %837  ;;  %v3242_v62 = vpack.c.bf16 %v570_v42, %v566_v0  ;;  %2458 = vmatpush3.bf16.msra.mxu0 %v2669_v53 }
 0x3bc   : > { %v916_v12 = vpop.xlane.xlu0 %915  ;;  %2419 = vmatprep.mubr.bf16.mxu1 %v965_v63  ;;  %v861_v17 = vsub.f32 %v3125_v5, %v838_v13  ;;  %v3244_v2 = vpack.c.bf16 %v572_v52, %v568_v1  ;;  %v575_v63 = vpop.f32.mrb[36].mxu0 }
 0x3bd   : > { %2704 = vrcp.f32 %v916_v12  ;;  %v2697_v14 = vpop.eup %2696  ;;  %v577_v3 = vpop.f32.mrb[37].mxu0  ;;  %v576_v12 = vadd.f32 %v575_v63, %v3007_v22 }
 0x3be   : > { %v952_v16 = vmul.f32 %v2697_v14, %v2681_v47  ;;  %v2699_v25 = vpop.eup %2698  ;;  %v885_v29 = vmul.f32 1.442695, %v861_v17  ;;  %2499 = vmatprep.subr.bf16.mxu0 %v3244_v2  ;;  %v578_v13 = vadd.f32 %v577_v3, %v3009_v24  ;;  %v579_v14 = vpop.f32.mrb[38].mxu0 }
 0x3bf   : > { %v842_v18 = vpop.xlane.xlu1 %841  ;;  %v953_v34 = vmul.f32 %v2699_v25, %v3154_v48 }
 0x3c0   : > { %v840_v19 = vpop.xlane.xlu0 %839  ;;  %v863_v20 = vsub.f32 %v3123_v4, %v842_v18  ;;  %v966_v23 = vpack.c.bf16 %v952_v16, %v951_v15  ;;  %v580_v15 = vadd.f32 %v579_v14, %v3007_v22  ;;  %v581_v16 = vpop.f32.mrb[39].mxu0 }
 0x3c1   : > { %v862_v21 = vsub.f32 %v3129_v7, %v840_v19  ;;  %v582_v17 = vadd.f32 %v581_v16, %v3009_v24  ;;  %v585_v18 = vpop.f32.mrb[40].mxu0 }
 0x3c2   : > { %v889_v26 = vmul.f32 1.442695, %v863_v20  ;;  %2420 = vmatmul.mubr.bf16.vlgmr.msra.gmra.mrb[16].mxu1 %v966_v23  ;;  %v3253_v19 = vpack.c.bf16 %v580_v15, %v576_v12  ;;  %v587_v20 = vpop.f32.mrb[41].mxu0  ;;  %v586_v23 = vadd.f32 %v585_v18, %v3007_v22 }
 0x3c3   : > { %v887_v27 = vmul.f32 1.442695, %v862_v21  ;;  %v2701_v28 = vpop.eup %2700  ;;  %v846_v31 = vpop.xlane.xlu1 %845  ;;  %2436 = vmatpush3.bf16.msra.mxu1 %v2666_v57  ;;  %v3255_v21 = vpack.c.bf16 %v582_v17, %v578_v13  ;;  %v588_v25 = vadd.f32 %v587_v20, %v3009_v24 }
 0x3c4   : > { %v844_v30 = vpop.xlane.xlu0 %843  ;;  %v2703_v32 = vpop.eup %2702  ;;  %2706 = vpow2.f32 %v889_v26  ;;  %v954_v4 = vmul.f32 %v2701_v28, %v3159_v50  ;;  %v865_v37 = vsub.f32 %v3133_v9, %v846_v31  ;;  %2437 = vmatprep.subr.bf16.mxu1 %v2667_v58 }
 0x3c5   : > { %v864_v5 = vsub.f32 %v3127_v6, %v844_v30  ;;  %2708 = vpow2.f32 %v887_v27  ;;  %v955_v40 = vmul.f32 %v2703_v32, %v3157_v49  ;;  %v589_v26 = vpop.f32.mrb[42].mxu0 }
 0x3c6   : > { %v967_v36 = vpack.c.bf16 %v954_v4, %v953_v34  ;;  %2710 = vpow2.f32 %v885_v29  ;;  %v893_v48 = vmul.f32 1.442695, %v865_v37  ;;  %v590_v27 = vadd.f32 %v589_v26, %v3007_v22  ;;  %v591_v28 = vpop.f32.mrb[43].mxu0 }
 0x3c7   : > { %v2705_v7 = vpop.eup %2704  ;;  %v891_v35 = vmul.f32 1.442695, %v864_v5  ;;  %v850_v38 = vpop.xlane.xlu1 %849  ;;  %2438 = vmatpush3.bf16.msra.mxu1 %v2667_v58  ;;  %v592_v29 = vadd.f32 %v591_v28, %v3009_v24 }
 0x3c8   : > { %v848_v39 = vpop.xlane.xlu0 %847  ;;  %v956_v41 = vmul.f32 %v2705_v7, %v3163_v51  ;;  %2423 = vmatprep.mubr.bf16.mxu1 %v967_v36  ;;  %v867_v6 = vsub.f32 %v3131_v8, %v850_v38  ;;  %2439 = vmatprep.subr.bf16.mxu1 %v2668_v61  ;;  %v3263_v30 = vpack.c.bf16 %v590_v27, %v586_v23  ;;  %v595_v32 = vpop.f32.mrb[44].mxu0 }
 0x3c9   : > { %2712 = vpow2.f32 %v891_v35  ;;  %v866_v44 = vsub.f32 %v3137_v11, %v848_v39  ;;  %v3265_v31 = vpack.c.bf16 %v592_v29, %v588_v25  ;;  %v596_v5 = vadd.f32 %v595_v32, %v3007_v22  ;;  %v597_v34 = vpop.f32.mrb[45].mxu0 }
 0x3ca   : > { %v968_v45 = vpack.c.bf16 %v956_v41, %v955_v40  ;;  %v897_v46 = vmul.f32 1.442695, %v867_v6  ;;  %v598_v4 = vadd.f32 %v597_v34, %v3009_v24  ;;  %v599_v7 = vpop.f32.mrb[46].mxu0 }
 0x3cb   : > { %v895_v47 = vmul.f32 1.442695, %v866_v44  ;;  %2440 = vmatpush3.bf16.msra.mxu1 %v2668_v61  ;;  %v600_v35 = vadd.f32 %v599_v7, %v3007_v22  ;;  %v601_v36 = vpop.f32.mrb[47].mxu0 }
 0x3cc   : > { %2424 = vmatmul.mubr.bf16.gmra.mrb[20].mxu1 %v968_v45  ;;  %v852_v50 = vpop.xlane.xlu0 %851  ;;  %2714 = vpow2.f32 %v897_v46  ;;  %2441 = vmatprep.subr.bf16.mxu1 %v2669_v53  ;;  %v602_v37 = vadd.f32 %v601_v36, %v3009_v24  ;;  %v605_v40 = vpop.f32.mrb[48].mxu0 }
 0x3cd   : > { %v868_v9 = vsub.f32 %v3135_v10, %v852_v50  ;;  %2716 = vpow2.f32 %v895_v47  ;;  %v3273_v38 = vpack.c.bf16 %v600_v35, %v596_v5  ;;  %v606_v41 = vadd.f32 %v605_v40, %v3007_v22  ;;  %v607_v6 = vpop.f32.mrb[49].mxu0 }
 0x3ce   : > { %v3205_v54 = vpop.eup %2706  ;;  %2718 = vpow2.f32 %v893_v48  ;;  %v3275_v39 = vpack.c.bf16 %v602_v37, %v598_v4  ;;  %v608_v44 = vadd.f32 %v607_v6, %v3009_v24  ;;  %v609_v45 = vpop.f32.mrb[50].mxu0 }
 0x3cf   : > { %v899_v49 = vmul.f32 1.442695, %v868_v9  ;;  %v3207_v51 = vpop.eup %2708  ;;  %921 = vadd.xlane.f32.xlu1 %v3205_v54  ;;  %2442 = vmatpush3.bf16.msra.mxu1 %v2669_v53  ;;  %v610_v46 = vadd.f32 %v609_v45, %v3007_v22  ;;  %v611_v47 = vpop.f32.mrb[51].mxu0 }
 0x3d0   : > { %919 = vadd.xlane.f32.xlu0 %v3207_v51  ;;  %v3211_v8 = vpop.eup %2710  ;;  %v612_v48 = vadd.f32 %v611_v47, %v3009_v24 }
 0x3d1   : > { %2720 = vpow2.f32 %v899_v49  ;;  %v3283_v50 = vpack.c.bf16 %v610_v46, %v606_v41  ;;  %v615_v49 = vpop.f32.mrb[52].mxu0 }
 0x3d2   : > { %v3285_v9 = vpack.c.bf16 %v612_v48, %v608_v44  ;;  %v616_v58 = vadd.f32 %v615_v49, %v3007_v22  ;;  %v617_v59 = vpop.f32.mrb[53].mxu0 }
 0x3d3   : > { %v3213_v11 = vpop.eup %2712  ;;  %917 = vadd.xlane.f32.xlu1 %v3211_v8  ;;  %v618_v60 = vadd.f32 %v617_v59, %v3009_v24  ;;  %v619_v61 = vpop.f32.mrb[54].mxu0 }
 0x3d4   : > { %923 = vadd.xlane.f32.xlu0 %v3213_v11  ;;  %v620_v0 = vadd.f32 %v619_v61, %v3007_v22  ;;  %v621_v1 = vpop.f32.mrb[55].mxu0 }
 0x3d5   : > { %v622_v33 = vadd.f32 %v621_v1, %v3009_v24  ;;  %v625_v52 = vpop.f32.mrb[56].mxu0 }
 0x3d6   : > { %v3217_v10 = vpop.eup %2714  ;;  %v3293_v42 = vpack.c.bf16 %v620_v0, %v616_v58  ;;  %v626_v53 = vadd.f32 %v625_v52, %v3007_v22  ;;  %v627_v63 = vpop.f32.mrb[57].mxu0 }
 0x3d7   : > { %v3219_v55 = vpop.eup %2716  ;;  %929 = vadd.xlane.f32.xlu1 %v3217_v10  ;;  %v3295_v43 = vpack.c.bf16 %v622_v33, %v618_v60  ;;  %v628_v3 = vadd.f32 %v627_v63, %v3009_v24  ;;  %v629_v12 = vpop.f32.mrb[58].mxu0 }
 0x3d8   : > { %927 = vadd.xlane.f32.xlu0 %v3219_v55  ;;  %v3223_v56 = vpop.eup %2718  ;;  %v630_v13 = vadd.f32 %v629_v12, %v3007_v22  ;;  %v631_v14 = vpop.f32.mrb[59].mxu0 }
 0x3d9   : > { %v632_v15 = vadd.f32 %v631_v14, %v3009_v24  ;;  %v635_v18 = vpop.f32.mrb[60].mxu0 }
 0x3da   : > { %v3303_v16 = vpack.c.bf16 %v630_v13, %v626_v53  ;;  %v636_v20 = vadd.f32 %v635_v18, %v3007_v22  ;;  %v637_v23 = vpop.f32.mrb[61].mxu0 }
 0x3db   : > { %v3225_v57 = vpop.eup %2720  ;;  %925 = vadd.xlane.f32.xlu1 %v3223_v56  ;;  %v3305_v17 = vpack.c.bf16 %v632_v15, %v628_v3  ;;  %v638_v25 = vadd.f32 %v637_v23, %v3009_v24  ;;  %v639_v26 = vpop.f32.mrb[62].mxu0 }
 0x3dc   : > { %931 = vadd.xlane.f32.xlu0 %v3225_v57  ;;  %v640_v27 = vadd.f32 %v639_v26, %v3007_v22  ;;  %v641_v28 = vpop.f32.mrb[63].mxu0 }
 0x3dd   : > { %v642_v29 = vadd.f32 %v641_v28, %v3009_v24 }
 0x3de   : > { %v3313_v32 = vpack.c.bf16 %v640_v27, %v636_v20 }
 0x3df   : > { %v3315_v5 = vpack.c.bf16 %v642_v29, %v638_v25 }
 0x3ec   : > { %1383 = vrot.lane.b32.xlu1 %v3242_v62, %s2867_s12 }
 0x3f0   : > { %1387 = vrot.lane.b32.xlu1 %v3263_v30, %s2867_s12 }
 0x3f2   : > { %1385 = vrot.lane.b32.xlu0 %v3253_v19, %s2867_s12 }
 0x3f6   : > { %1389 = vrot.lane.b32.xlu0 %v3273_v38, %s2867_s12 }
 0x3fa   : > { %1391 = vrot.lane.b32.xlu0 %v3283_v50, %s2867_s12 }
 0x3fe   : > { %1393 = vrot.lane.b32.xlu0 %v3293_v42, %s2867_s12 }
 0x402   : > { %1395 = vrot.lane.b32.xlu0 %v3303_v16, %s2867_s12 }
 0x406   : > { %1397 = vrot.lane.b32.xlu0 %v3313_v32, %s2867_s12 }
 0x45c   : > { %v922_v34 = vpop.xlane.xlu1 %921 }
 0x45d   : > { %v920_v4 = vpop.xlane.xlu0 %919 }
 0x45e   : > { %2722 = vrcp.f32 %v920_v4 }
 0x45f   : > { %2724 = vrcp.f32 %v922_v34 }
 0x460   : > { %v918_v7 = vpop.xlane.xlu1 %917 }
 0x461   : > { %2726 = vrcp.f32 %v918_v7  ;;  %v924_v35 = vpop.xlane.xlu0 %923 }
 0x462   : > { %2728 = vrcp.f32 %v924_v35 }
 0x464   : > { %v930_v36 = vpop.xlane.xlu1 %929 }
 0x465   : > { %v928_v22 = vpop.xlane.xlu0 %927 }
 0x466   : > { %2730 = vrcp.f32 %v928_v22 }
 0x467   : > { %2732 = vrcp.f32 %v930_v36 }
 0x468   : > { %v926_v24 = vpop.xlane.xlu1 %925  ;;  %v2723_v37 = vpop.eup %2722 }
 0x469   : > { %2734 = vrcp.f32 %v926_v24  ;;  %v932_v40 = vpop.xlane.xlu0 %931  ;;  %v2725_v41 = vpop.eup %2724  ;;  %v958_v46 = vmul.f32 %v2723_v37, %v3207_v51 }
 0x46a   : > { %2736 = vrcp.f32 %v932_v40  ;;  %v959_v48 = vmul.f32 %v2725_v41, %v3205_v54 }
 0x46b   : > { %v2727_v6 = vpop.eup %2726 }
 0x46c   : > { %v2729_v44 = vpop.eup %2728  ;;  %v957_v45 = vmul.f32 %v2727_v6, %v3211_v8  ;;  %v1384_v47 = vpop.permute.xlu1 %1383 }
 0x46d   : > { %v960_v49 = vmul.f32 %v2729_v44, %v3213_v11  ;;  %2587 = vmatprep.subr.msk.bf16.mxu1 %vm402_vm0, %v1384_v47  ;;  %v1424_v26 = vsel %vm402_vm0, %v1384_v47, 0  ;;  %v1386_v27 = vpop.permute.xlu0 %1385 }
 0x46e   : > { %v969_v58 = vpack.c.bf16 %v958_v46, %v957_v45  ;;  %v1427_v34 = vsel %vm402_vm0, %v1386_v27, 0 }
 0x46f   : > { %v970_v59 = vpack.c.bf16 %v960_v49, %v959_v48 }
 0x470   : > { %2427 = vmatprep.mubr.bf16.mxu1 %v969_v58  ;;  %v2731_v60 = vpop.eup %2730 }
 0x471   : > { %2428 = vmatmul.mubr.bf16.gmra.mrb[24].mxu1 %v970_v59  ;;  %v2733_v61 = vpop.eup %2732  ;;  %v962_v8 = vmul.f32 %v2731_v60, %v3219_v55  ;;  %v1390_v4 = vpop.permute.xlu0 %1389 }
 0x472   : > { %v963_v51 = vmul.f32 %v2733_v61, %v3217_v10  ;;  %v1433_v36 = vsel %vm402_vm0, %v1390_v4, 0 }
 0x473   : > { %v2735_v0 = vpop.eup %2734 }
 0x474   : > { %v2737_v1 = vpop.eup %2736  ;;  %v961_v33 = vmul.f32 %v2735_v0, %v3223_v56 }
 0x475   : > { %v964_v54 = vmul.f32 %v2737_v1, %v3225_v57  ;;  %v1388_v57 = vpop.permute.xlu1 %1387  ;;  %v1392_v35 = vpop.permute.xlu0 %1391 }
 0x476   : > { %v971_v52 = vpack.c.bf16 %v962_v8, %v961_v33  ;;  %v1430_v7 = vsel %vm402_vm0, %v1388_v57, 0  ;;  %v1436_v24 = vsel %vm402_vm0, %v1392_v35, 0 }
 0x477   : > { %v972_v11 = vpack.c.bf16 %v964_v54, %v963_v51 }
 0x478   : > { %2431 = vmatprep.mubr.bf16.mxu1 %v971_v52 }
 0x479   : > { %2432 = vmatmul.mubr.bf16.gmra.mrb[28].mxu1 %v972_v11  ;;  %v1394_v22 = vpop.permute.xlu0 %1393 }
 0x47a   : > { %v1439_v37 = vsel %vm402_vm0, %v1394_v22, 0 }
 0x495   : > { %v2421_v53 = vpop.f32.mrb[16].mxu1 }
 0x496   : > { %v1015_v63 = vpop.f32.mrb[17].mxu1 }
 0x497   : > { %v2422_v3 = vpop.f32.mrb[18].mxu1 }
 0x498   : > { %v1079_v12 = vpack.c.bf16 %v2422_v3, %v2421_v53  ;;  %v1018_v13 = vpop.f32.mrb[19].mxu1 }
 0x499   : > { %v1078_v14 = vpack.c.bf16 %v1018_v13, %v1015_v63 }
 0x49b   : > { %1094 = vxpose.xlu1.c.b16.start [1/4] (short) (narrow) %v1078_v14, 64 }
 0x49f   : > { %v2425_v15 = vpop.f32.mrb[20].mxu1  ;;  %1095 = vxpose.xlu1.c.b16.cont [2/4] (short) (narrow) %v1079_v12, 64 }
 0x4a0   : > { %v1031_v18 = vpop.f32.mrb[21].mxu1 }
 0x4a1   : > { %v2426_v56 = vpop.f32.mrb[22].mxu1 }
 0x4a2   : > { %v1081_v55 = vpack.c.bf16 %v2426_v56, %v2425_v15  ;;  %v1034_v20 = vpop.f32.mrb[23].mxu1 }
 0x4a3   : > { %v1080_v10 = vpack.c.bf16 %v1034_v20, %v1031_v18 }
 0x4a5   : > { %1096 = vxpose.xlu1.c.b16.cont [3/4] (short) (narrow) %v1080_v10, 64 }
 0x4a9   : > { %1097 = vxpose.xlu1.c.b16.end [4/4] (short) (narrow) %v1081_v55, 64 }
 0x503   : > { %v1102_v23 = vpop.trf.xlu1 }
 0x504   : > { %2443 = vmatprep.mubr.msk.bf16.mxu1 %vm402_vm0, %v1102_v23 }
 0x507   : > { %v1103_v25 = vpop.trf.xlu1 }
 0x508   : > { %2444 = vmatmul.mubr.msk.bf16.vlgmr.msra.gmra.mrb[32].mxu1 %vm402_vm0, %v1103_v25 }
 0x509   : > { %2468 = vmatpush3.bf16.xpose.msra.mxu1 %v1424_v26 }
 0x50a   : > { %2588 = vmatprep.subr.msk.bf16.mxu1 %vm402_vm0, %v1386_v27 }
 0x50b   : > { %v1104_v28 = vpop.trf.xlu1 }
 0x50c   : > { %2447 = vmatprep.mubr.msk.bf16.mxu1 %vm402_vm0, %v1104_v28 }
 0x50f   : > { %v1105_v29 = vpop.trf.xlu1 }
 0x510   : > { %2448 = vmatmul.mubr.msk.bf16.gmra.mrb[36].mxu1 %vm402_vm0, %v1105_v29 }
 0x511   : > { %2470 = vmatpush3.bf16.xpose.msra.mxu1 %v1427_v34  ;;  %2483 = vmatprep.mubr.msk.bf16.mxu1 %vm402_vm0, %v3242_v62  ;;  %v1396_v62 = vpop.permute.xlu0 %1395 }
 0x512   : > { %2589 = vmatprep.subr.msk.bf16.mxu1 %vm402_vm0, %v1388_v57  ;;  %v1442_v41 = vsel %vm402_vm0, %v1396_v62, 0 }
 0x515   : > { %v1398_v40 = vpop.permute.xlu0 %1397 }
 0x516   : > { %v1445_v6 = vsel %vm402_vm0, %v1398_v40, 0 }
 0x519   : > { %2472 = vmatpush3.bf16.xpose.msra.mxu1 %v1430_v7 }
 0x51a   : > { %2590 = vmatprep.subr.msk.bf16.mxu1 %vm402_vm0, %v1390_v4 }
 0x521   : > { %2474 = vmatpush3.bf16.xpose.msra.mxu1 %v1433_v36 }
 0x522   : > { %2591 = vmatprep.subr.msk.bf16.mxu1 %vm402_vm0, %v1392_v35 }
 0x529   : > { %2476 = vmatpush3.bf16.xpose.msra.mxu1 %v1436_v24 }
 0x52a   : > { %2592 = vmatprep.subr.msk.bf16.mxu1 %vm402_vm0, %v1394_v22 }
 0x531   : > { %2478 = vmatpush3.bf16.xpose.msra.mxu1 %v1439_v37 }
 0x532   : > { %2593 = vmatprep.subr.msk.bf16.mxu1 %vm402_vm0, %v1396_v62 }
 0x539   : > { %2480 = vmatpush3.bf16.xpose.msra.mxu1 %v1442_v41 }
 0x53a   : > { %2594 = vmatprep.subr.msk.bf16.mxu1 %vm402_vm0, %v1398_v40 }
 0x541   : > { %2482 = vmatpush3.bf16.xpose.msra.mxu1 %v1445_v6 }
 0x542   : > { %2563 = vmatprep.subr.bf16.mxu1 %v3244_v2 }
 0x544   : > { %v3350_v44 = vpop.f32.mrb[24].mxu1 }
 0x545   : > { %v3352_v45 = vpop.f32.mrb[25].mxu1 }
 0x546   : > { %v3354_v46 = vpop.f32.mrb[26].mxu1 }
 0x547   : > { %v1083_v47 = vpack.c.bf16 %v3354_v46, %v3350_v44  ;;  %v3360_v48 = vpop.f32.mrb[27].mxu1 }
 0x548   : > { %2484 = vmatmul.mubr.msk.bf16.vlgmr.msra.gmra.mrb[40].mxu1 %vm402_vm0, %v3253_v19  ;;  %v1082_v49 = vpack.c.bf16 %v3360_v48, %v3352_v45 }
 0x549   : > { %2487 = vmatprep.mubr.msk.bf16.mxu1 %vm402_vm0, %v3263_v30  ;;  %2571 = vmatpush3.bf16.msra.mxu1 %v3244_v2 }
 0x54a   : > { %2564 = vmatprep.subr.bf16.mxu1 %v3255_v21 }
 0x54c   : > { %v3369_v58 = vpop.f32.mrb[28].mxu1 }
 0x54d   : > { %2572 = vmatpush3.bf16.msra.mxu1 %v3255_v21  ;;  %v3372_v59 = vpop.f32.mrb[29].mxu1 }
 0x54e   : > { %2565 = vmatprep.subr.bf16.mxu1 %v3265_v31  ;;  %v3374_v19 = vpop.f32.mrb[30].mxu1 }
 0x54f   : > { %v1085_v60 = vpack.c.bf16 %v3374_v19, %v3369_v58  ;;  %v3380_v30 = vpop.f32.mrb[31].mxu1 }
 0x550   : > { %2488 = vmatmul.mubr.msk.bf16.gmra.mrb[44].mxu1 %vm402_vm0, %v3273_v38  ;;  %v1084_v61 = vpack.c.bf16 %v3380_v30, %v3372_v59 }
 0x551   : > { %2491 = vmatprep.mubr.msk.bf16.mxu1 %vm402_vm0, %v3283_v50  ;;  %2573 = vmatpush3.bf16.msra.mxu1 %v3265_v31 }
 0x552   : > { %2566 = vmatprep.subr.bf16.mxu1 %v3275_v39 }
 0x555   : > { %2574 = vmatpush3.bf16.msra.mxu1 %v3275_v39 }
 0x556   : > { %2567 = vmatprep.subr.bf16.mxu1 %v3285_v9 }
 0x558   : > { %2492 = vmatmul.mubr.msk.bf16.gmra.mrb[48].mxu1 %vm402_vm0, %v3293_v42 }
 0x559   : > { %2495 = vmatprep.mubr.msk.bf16.mxu1 %vm402_vm0, %v3303_v16  ;;  %2575 = vmatpush3.bf16.msra.mxu1 %v3285_v9 }
 0x55a   : > { %2568 = vmatprep.subr.bf16.mxu1 %v3295_v43 }
 0x55d   : > { %2576 = vmatpush3.bf16.msra.mxu1 %v3295_v43 }
 0x55e   : > { %2569 = vmatprep.subr.bf16.mxu1 %v3305_v17 }
 0x560   : > { %2496 = vmatmul.mubr.msk.bf16.gmra.mrb[52].mxu1 %vm402_vm0, %v3313_v32 }
 0x561   : > { %2577 = vmatpush3.bf16.msra.mxu1 %v3305_v17 }
 0x562   : > { %2570 = vmatprep.subr.bf16.mxu1 %v3315_v5 }
 0x565   : > { %2578 = vmatpush3.bf16.msra.mxu1 %v3315_v5 }
 0x5db   : > { %v3403_v38 = vpop.f32.mrb[32].mxu1 }
 0x5dc   : > { %v3405_v50 = vpop.f32.mrb[33].mxu1 }
 0x5dd   : > { %v3407_v42 = vpop.f32.mrb[34].mxu1 }
 0x5de   : > { %v3409_v16 = vpop.f32.mrb[35].mxu1 }
 0x5e3   : > { %v3411_v0 = vpop.f32.mrb[36].mxu1 }
 0x5e4   : > { %v3413_v1 = vpop.f32.mrb[37].mxu1 }
 0x5e5   : > { %v3415_v33 = vpop.f32.mrb[38].mxu1 }
 0x5e6   : > { %v3417_v32 = vpop.f32.mrb[39].mxu1 }
 0x61b   : > { %v2485_v8 = vpop.f32.mrb[40].mxu1 }
 0x61c   : > { %v1481_v51 = vpop.f32.mrb[41].mxu1 }
 0x61d   : > { %1544 = vmax.xlane.f32.xlu0 %v1481_v51  ;;  %v2486_v54 = vpop.f32.mrb[42].mxu1 }
 0x61e   : > { %v1484_v52 = vpop.f32.mrb[43].mxu1 }
 0x61f   : > { %1546 = vmax.xlane.f32.xlu1 %v1484_v52 }
 0x621   : > { %1548 = vmax.xlane.f32.xlu0 %v2485_v8 }
 0x623   : > { %v2489_v11 = vpop.f32.mrb[44].mxu1 }
 0x624   : > { %v1497_v53 = vpop.f32.mrb[45].mxu1 }
 0x625   : > { %1550 = vmax.xlane.f32.xlu0 %v2486_v54  ;;  %1552 = vmax.xlane.f32.xlu1 %v1497_v53  ;;  %v2490_v63 = vpop.f32.mrb[46].mxu1 }
 0x626   : > { %v1500_v3 = vpop.f32.mrb[47].mxu1 }
 0x629   : > { %1556 = vmax.xlane.f32.xlu1 %v2489_v11  ;;  %1554 = vmax.xlane.f32.xlu0 %v1500_v3 }
 0x62b   : > { %v2493_v12 = vpop.f32.mrb[48].mxu1 }
 0x62c   : > { %v3419_v13 = vpop.f32.mrb[49].mxu1 }
 0x62d   : > { %1558 = vmax.xlane.f32.xlu0 %v2490_v63  ;;  %1564 = vmax.xlane.f32.xlu1 %v2493_v12  ;;  %v3421_v14 = vpop.f32.mrb[50].mxu1 }
 0x62e   : > { %v3423_v15 = vpop.f32.mrb[51].mxu1 }
 0x631   : > { %1560 = vmax.xlane.f32.xlu1 %v3419_v13  ;;  %1566 = vmax.xlane.f32.xlu0 %v3421_v14 }
 0x633   : > { %v3427_v18 = vpop.f32.mrb[52].mxu1 }
 0x634   : > { %v3429_v56 = vpop.f32.mrb[53].mxu1 }
 0x635   : > { %1562 = vmax.xlane.f32.xlu0 %v3423_v15  ;;  %1568 = vmax.xlane.f32.xlu1 %v3429_v56  ;;  %v3433_v55 = vpop.f32.mrb[54].mxu1 }
 0x636   : > { %v3435_v20 = vpop.f32.mrb[55].mxu1 }
 0x639   : > { %1572 = vmax.xlane.f32.xlu1 %v3427_v18  ;;  %1570 = vmax.xlane.f32.xlu0 %v3435_v20 }
 0x63d   : > { %1574 = vmax.xlane.f32.xlu0 %v3433_v55 }
 0x6aa   : > { %v1545_v10 = vpop.xlane.xlu0 %1544 }
 0x6ab   : > { %v1576_v57 = vsub.f32 %v1481_v51, %v1545_v10 }
 0x6ac   : > { %v1547_v23 = vpop.xlane.xlu1 %1546 }
 0x6ad   : > { %v1592_v28 = vmul.f32 1.442695, %v1576_v57  ;;  %v1577_v29 = vsub.f32 %v1484_v52, %v1547_v23 }
 0x6ae   : > { %v1549_v25 = vpop.xlane.xlu0 %1548 }
 0x6af   : > { %v1578_v26 = vsub.f32 %v2485_v8, %v1549_v25  ;;  %v1594_v36 = vmul.f32 1.442695, %v1577_v29 }
 0x6b1   : > { %v1596_v27 = vmul.f32 1.442695, %v1578_v26 }
 0x6b2   : > { %v1551_v34 = vpop.xlane.xlu0 %1550  ;;  %v1553_v4 = vpop.xlane.xlu1 %1552 }
 0x6b3   : > { %2738 = vpow2.f32 %v1596_v27  ;;  %v1579_v7 = vsub.f32 %v2486_v54, %v1551_v34  ;;  %v1580_v22 = vsub.f32 %v1497_v53, %v1553_v4 }
 0x6b4   : > { %2740 = vpow2.f32 %v1592_v28 }
 0x6b5   : > { %v1598_v35 = vmul.f32 1.442695, %v1579_v7  ;;  %v1600_v41 = vmul.f32 1.442695, %v1580_v22 }
 0x6b6   : > { %v1557_v24 = vpop.xlane.xlu1 %1556  ;;  %v1555_v62 = vpop.xlane.xlu0 %1554 }
 0x6b7   : > { %2742 = vpow2.f32 %v1598_v35  ;;  %v1582_v37 = vsub.f32 %v2489_v11, %v1557_v24  ;;  %v1581_v51 = vsub.f32 %v1500_v3, %v1555_v62 }
 0x6b8   : > { %2744 = vpow2.f32 %v1594_v36 }
 0x6b9   : > { %v1604_v40 = vmul.f32 1.442695, %v1582_v37  ;;  %v1602_v54 = vmul.f32 1.442695, %v1581_v51 }
 0x6ba   : > { %v1559_v6 = vpop.xlane.xlu0 %1558  ;;  %v1565_v8 = vpop.xlane.xlu1 %1564 }
 0x6bb   : > { %2746 = vpow2.f32 %v1604_v40  ;;  %v1583_v52 = vsub.f32 %v2490_v63, %v1559_v6  ;;  %v1586_v53 = vsub.f32 %v2493_v12, %v1565_v8 }
 0x6bc   : > { %2748 = vpow2.f32 %v1600_v41 }
 0x6bd   : > { %v3440_v10 = vpop.eup %2738  ;;  %v1606_v57 = vmul.f32 1.442695, %v1583_v52  ;;  %v1612_v63 = vmul.f32 1.442695, %v1586_v53 }
 0x6be   : > { %1628 = vadd.xlane.f32.xlu1 %v3440_v10  ;;  %v3443_v23 = vpop.eup %2740  ;;  %v1561_v11 = vpop.xlane.xlu1 %1560 }
 0x6bf   : > { %2750 = vpow2.f32 %v1606_v57  ;;  %v1567_v26 = vpop.xlane.xlu0 %1566  ;;  %v1584_v3 = vsub.f32 %v3419_v13, %v1561_v11 }
 0x6c0   : > { %2752 = vpow2.f32 %v1602_v54  ;;  %v1587_v34 = vsub.f32 %v3421_v14, %v1567_v26 }
 0x6c1   : > { %v3445_v25 = vpop.eup %2742  ;;  %2754 = vpow2.f32 %v1612_v63  ;;  %v1608_v12 = vmul.f32 1.442695, %v1584_v3 }
 0x6c2   : > { %1624 = vadd.xlane.f32.xlu1 %v3443_v23  ;;  %1630 = vadd.xlane.f32.xlu0 %v3445_v25  ;;  %v3450_v27 = vpop.eup %2744  ;;  %v1569_v29 = vpop.xlane.xlu1 %1568  ;;  %v1614_v13 = vmul.f32 1.442695, %v1587_v34 }
 0x6c3   : > { %v1563_v7 = vpop.xlane.xlu0 %1562  ;;  %2756 = vpow2.f32 %v1608_v12  ;;  %v1588_v41 = vsub.f32 %v3429_v56, %v1569_v29 }
 0x6c4   : > { %v1585_v36 = vsub.f32 %v3423_v15, %v1563_v7  ;;  %2758 = vpow2.f32 %v1614_v13 }
 0x6c5   : > { %v3452_v28 = vpop.eup %2746  ;;  %v1616_v15 = vmul.f32 1.442695, %v1588_v41 }
 0x6c6   : > { %1636 = vadd.xlane.f32.xlu1 %v3452_v28  ;;  %1626 = vadd.xlane.f32.xlu0 %v3450_v27  ;;  %v3457_v4 = vpop.eup %2748  ;;  %v1573_v22 = vpop.xlane.xlu1 %1572  ;;  %v1610_v14 = vmul.f32 1.442695, %v1585_v36 }
 0x6c7   : > { %v1590_v62 = vsub.f32 %v3427_v18, %v1573_v22  ;;  %v1571_v40 = vpop.xlane.xlu0 %1570 }
 0x6c8   : > { %2760 = vpow2.f32 %v1610_v14  ;;  %v1589_v51 = vsub.f32 %v3435_v20, %v1571_v40 }
 0x6c9   : > { %v3459_v35 = vpop.eup %2750  ;;  %v1620_v6 = vmul.f32 1.442695, %v1590_v62 }
 0x6ca   : > { %1632 = vadd.xlane.f32.xlu1 %v3457_v4  ;;  %1638 = vadd.xlane.f32.xlu0 %v3459_v35  ;;  %v3464_v24 = vpop.eup %2752  ;;  %v1618_v18 = vmul.f32 1.442695, %v1589_v51 }
 0x6cb   : > { %v3468_v37 = vpop.eup %2754  ;;  %2762 = vpow2.f32 %v1620_v6  ;;  %v1575_v52 = vpop.xlane.xlu0 %1574 }
 0x6cc   : > { %2764 = vpow2.f32 %v1616_v15  ;;  %v1591_v54 = vsub.f32 %v3433_v55, %v1575_v52 }
 0x6cd   : > { %v3472_v8 = vpop.eup %2756  ;;  %2766 = vpow2.f32 %v1618_v18 }
 0x6ce   : > { %1634 = vadd.xlane.f32.xlu0 %v3464_v24  ;;  %v3476_v57 = vpop.eup %2758  ;;  %v1622_v56 = vmul.f32 1.442695, %v1591_v54 }
 0x6d0   : > { %2768 = vpow2.f32 %v1622_v56 }
 0x6d2   : > { %1644 = vadd.xlane.f32.xlu0 %v3468_v37  ;;  %v3480_v53 = vpop.eup %2760 }
 0x6d5   : > { %v3483_v11 = vpop.eup %2762 }
 0x6d6   : > { %1640 = vadd.xlane.f32.xlu0 %v3472_v8  ;;  %v3486_v20 = vpop.eup %2764 }
 0x6d7   : > { %v3489_v26 = vpop.eup %2766 }
 0x6da   : > { %1646 = vadd.xlane.f32.xlu0 %v3476_v57  ;;  %v3492_v55 = vpop.eup %2768 }
 0x6de   : > { %1642 = vadd.xlane.f32.xlu0 %v3480_v53 }
 0x6e2   : > { %1652 = vadd.xlane.f32.xlu0 %v3483_v11 }
 0x6e6   : > { %1648 = vadd.xlane.f32.xlu0 %v3486_v20 }
 0x6ea   : > { %1650 = vadd.xlane.f32.xlu0 %v3489_v26 }
 0x6ee   : > { %1654 = vadd.xlane.f32.xlu0 %v3492_v55 }
 0x6f7   : > { %1211 = vxpose.xlu1.c.b16.start [1/4] (short) (narrow) %v1082_v49, 64 }
 0x6fb   : > { %1212 = vxpose.xlu1.c.b16.cont [2/4] (short) (narrow) %v1083_v47, 64 }
 0x6ff   : > { %1213 = vxpose.xlu1.c.b16.cont [3/4] (short) (narrow) %v1084_v61, 64 }
 0x703   : > { %1214 = vxpose.xlu1.c.b16.end [4/4] (short) (narrow) %v1085_v60, 64 }
 0x74b   : > { %v1629_v63 = vpop.xlane.xlu1 %1628 }
 0x74f   : > { %v1625_v3 = vpop.xlane.xlu1 %1624  ;;  %v1631_v29 = vpop.xlane.xlu0 %1630 }
 0x753   : > { %v1637_v12 = vpop.xlane.xlu1 %1636  ;;  %v1627_v34 = vpop.xlane.xlu0 %1626 }
 0x754   : > { %2770 = vrcp.f32 %v1627_v34 }
 0x755   : > { %2772 = vrcp.f32 %v1625_v3 }
 0x756   : > { %2774 = vrcp.f32 %v1631_v29 }
 0x757   : > { %v1639_v7 = vpop.xlane.xlu0 %1638  ;;  %v1633_v45 = vpop.xlane.xlu1 %1632 }
 0x75b   : > { %v1635_v48 = vpop.xlane.xlu0 %1634 }
 0x75c   : > { %2776 = vrcp.f32 %v1635_v48 }
 0x75d   : > { %v1219_v44 = vpop.trf.xlu1  ;;  %2778 = vrcp.f32 %v1629_v63 }
 0x75e   : > { %2459 = vmatprep.mubr.msk.bf16.mxu0 %vm402_vm0, %v1219_v44  ;;  %v2771_v49 = vpop.eup %2770  ;;  %2780 = vrcp.f32 %v1633_v45 }
 0x75f   : > { %v1645_v46 = vpop.xlane.xlu0 %1644  ;;  %v2773_v59 = vpop.eup %2772  ;;  %v1673_v60 = vmul.f32 %v2771_v49, %v3450_v27  ;;  %2782 = vrcp.f32 %v1637_v12 }
 0x760   : > { %v1672_v61 = vmul.f32 %v2773_v59, %v3443_v23  ;;  %2784 = vrcp.f32 %v1639_v7 }
 0x761   : > { %v1220_v47 = vpop.trf.xlu1 }
 0x762   : > { %2460 = vmatmul.mubr.msk.bf16.vlgmr.msra.gmra.mrb[64].mxu0 %vm402_vm0, %v1220_v47  ;;  %v1688_v36 = vpack.c.bf16 %v1673_v60, %v1672_v61 }
 0x763   : > { %2500 = vmatpush3.bf16.msra.mxu0 %v3244_v2  ;;  %v1641_v58 = vpop.xlane.xlu0 %1640 }
 0x764   : > { %2501 = vmatprep.subr.bf16.mxu0 %v3255_v21 }
 0x765   : > { %v1221_v19 = vpop.trf.xlu1 }
 0x766   : > { %2463 = vmatprep.mubr.msk.bf16.mxu0 %vm402_vm0, %v1221_v19 }
 0x767   : > { %2502 = vmatpush3.bf16.msra.mxu0 %v3255_v21  ;;  %v1647_v30 = vpop.xlane.xlu0 %1646 }
 0x768   : > { %2503 = vmatprep.subr.bf16.mxu0 %v3265_v31 }
 0x769   : > { %v1222_v13 = vpop.trf.xlu1 }
 0x76a   : > { %2464 = vmatmul.mubr.msk.bf16.gmra.mrb[68].mxu0 %vm402_vm0, %v1222_v13 }
 0x76b   : > { %2504 = vmatpush3.bf16.msra.mxu0 %v3265_v31  ;;  %v1643_v2 = vpop.xlane.xlu0 %1642  ;;  %2515 = vmatprep.mubr.bf16.mxu0 %v1688_v36 }
 0x76c   : > { %2505 = vmatprep.subr.bf16.mxu0 %v3275_v39 }
 0x76f   : > { %2506 = vmatpush3.bf16.msra.mxu0 %v3275_v39  ;;  %v1653_v27 = vpop.xlane.xlu0 %1652  ;;  %v2775_v39 = vpop.eup %2774 }
 0x770   : > { %2507 = vmatprep.subr.bf16.mxu0 %v3285_v9  ;;  %v2777_v23 = vpop.eup %2776  ;;  %v1675_v62 = vmul.f32 %v2775_v39, %v3445_v25 }
 0x771   : > { %v2779_v22 = vpop.eup %2778 }
 0x772   : > { %v2781_v14 = vpop.eup %2780  ;;  %v1674_v41 = vmul.f32 %v2779_v22, %v3440_v10 }
 0x773   : > { %2508 = vmatpush3.bf16.msra.mxu0 %v3285_v9  ;;  %v1649_v21 = vpop.xlane.xlu0 %1648  ;;  %v2783_v40 = vpop.eup %2782  ;;  %v1676_v15 = vmul.f32 %v2781_v14, %v3457_v4 }
 0x774   : > { %2509 = vmatprep.subr.bf16.mxu0 %v3295_v43  ;;  %2786 = vrcp.f32 %v1649_v21  ;;  %v2785_v6 = vpop.eup %2784  ;;  %v1678_v29 = vmul.f32 %v2783_v40, %v3452_v28 }
 0x775   : > { %2788 = vrcp.f32 %v1643_v2  ;;  %v1679_v63 = vmul.f32 %v2785_v6, %v3459_v35 }
 0x777   : > { %2510 = vmatpush3.bf16.msra.mxu0 %v3295_v43  ;;  %v1651_v31 = vpop.xlane.xlu0 %1650  ;;  %v1677_v43 = vmul.f32 %v2777_v23, %v3464_v24  ;;  %v1691_v45 = vpack.c.bf16 %v1679_v63, %v1678_v29  ;;  %v3600_v29 = vld [vmem:[%s3724_s4] ss:$0 sm:$0xff] }
 0x778   : > { %2790 = vrcp.f32 %v1651_v31  ;;  %2511 = vmatprep.subr.bf16.mxu0 %v3305_v17 }
 0x779   : > { %2792 = vrcp.f32 %v1641_v58  ;;  %v1690_v18 = vpack.c.bf16 %v1677_v43, %v1676_v15 }
 0x77a   : > { %2794 = vrcp.f32 %v1653_v27 }
 0x77b   : > { %2512 = vmatpush3.bf16.msra.mxu0 %v3305_v17  ;;  %v1655_v9 = vpop.xlane.xlu0 %1654  ;;  %v1689_v17 = vpack.c.bf16 %v1675_v62, %v1674_v41 }
 0x77c   : > { %2796 = vrcp.f32 %v1655_v9  ;;  %2513 = vmatprep.subr.bf16.mxu0 %v3315_v5 }
 0x77d   : > { %2798 = vrcp.f32 %v1647_v30 }
 0x77e   : > { %v2787_v51 = vpop.eup %2786  ;;  %2800 = vrcp.f32 %v1645_v46 }
 0x77f   : > { %2514 = vmatpush3.bf16.msra.mxu0 %v3315_v5  ;;  %v2789_v52 = vpop.eup %2788  ;;  %v1684_v24 = vmul.f32 %v2787_v51, %v3486_v20 }
 0x780   : > { %v1681_v5 = vmul.f32 %v2789_v52, %v3480_v53 }
 0x782   : > { %v2791_v25 = vpop.eup %2790  ;;  %2516 = vmatmul.mubr.bf16.vlgmr.msra.gmra.mrb[72].mxu0 %v1689_v17 }
 0x783   : > { %v2793_v54 = vpop.eup %2792  ;;  %2519 = vmatprep.mubr.bf16.mxu0 %v1690_v18  ;;  %v1685_v56 = vmul.f32 %v2791_v25, %v3489_v26 }
 0x784   : > { %v2795_v10 = vpop.eup %2794  ;;  %v1680_v7 = vmul.f32 %v2793_v54, %v3472_v8  ;;  %v3550_v8 = vld [vmem:[%s3723_s3 + $0x8] sm:$0xff]  }
 0x785   : > { %v1694_v3 = vpack.c.bf16 %v1685_v56, %v1684_v24  ;;  %v1686_v12 = vmul.f32 %v2795_v10, %v3483_v11  ;;  %v3545_v11 = vld [vmem:[%s3723_s3] sm:$0xff]  }
 0x786   : > { %v2797_v4 = vpop.eup %2796  ;;  %v1692_v48 = vpack.c.bf16 %v1681_v5, %v1680_v7  ;;  %2531 = vmatprep.subr.bf16.mxu0 %v3545_v11 }
 0x787   : > { %v1687_v34 = vmul.f32 %v2797_v4, %v3492_v55  ;;  %2527 = vmatprep.mubr.bf16.mxu1 %v1694_v3  ;;  %v2799_v20 = vpop.eup %2798  ;;  %2532 = vmatpush3.bf16.msra.mxu0 %v3545_v11 }
 0x788   : > { %v2801_v44 = vpop.eup %2800  ;;  %v1683_v35 = vmul.f32 %v2799_v20, %v3476_v57  ;;  %2533 = vmatprep.subr.bf16.mxu0 %v3550_v8  ;;  %v3565_v57 = vld [vmem:[%s3723_s3 + $0x18] sm:$0xff]  }
 0x789   : > { %v1695_v26 = vpack.c.bf16 %v1687_v34, %v1686_v12  ;;  %v1682_v53 = vmul.f32 %v2801_v44, %v3468_v37  ;;  %v3558_v37 = vld [vmem:[%s3723_s3 + $0x10] sm:$0xff]  }
 0x78a   : > { %2520 = vmatmul.mubr.bf16.gmra.mrb[76].mxu0 %v1691_v45 }
 0x78b   : > { %2523 = vmatprep.mubr.bf16.mxu0 %v1692_v48  ;;  %2528 = vmatmul.mubr.bf16.vlgmr.msra.gmra.mrb[56].mxu1 %v1695_v26  ;;  %v1693_v28 = vpack.c.bf16 %v1683_v35, %v1682_v53 }
 0x78c   : > { %2534 = vmatpush3.bf16.msra.mxu0 %v3550_v8 }
 0x78d   : > { %2535 = vmatprep.subr.bf16.mxu0 %v3558_v37 }
 0x790   : > { %2536 = vmatpush3.bf16.msra.mxu0 %v3558_v37 }
 0x791   : > { %2537 = vmatprep.subr.bf16.mxu0 %v3565_v57 }
 0x792   : > { %2524 = vmatmul.mubr.bf16.gmra.mrb[80].mxu0 %v1693_v28 }
 0x794   : > { %2538 = vmatpush3.bf16.msra.mxu0 %v3565_v57 }
 0x795   : > { %2547 = vmatprep.subr.bf16.mxu0 %v3545_v11 }
 0x835   : > { %v2461_v55 = vpop.f32.mrb[64].mxu0 }
 0x836   : > { %v1273_v46 = vpop.f32.mrb[65].mxu0 }
 0x837   : > { %v2462_v47 = vpop.f32.mrb[66].mxu0 }
 0x838   : > { %v1276_v49 = vpop.f32.mrb[67].mxu0 }
 0x83d   : > { %v2465_v58 = vpop.f32.mrb[68].mxu0 }
 0x83e   : > { %v1289_v59 = vpop.f32.mrb[69].mxu0 }
 0x83f   : > { %v2466_v19 = vpop.f32.mrb[70].mxu0 }
 0x840   : > { %v1292_v60 = vpop.f32.mrb[71].mxu0 }
 0x855   : > { %v2517_v30 = vpop.f32.mrb[72].mxu0 }
 0x856   : > { %v1738_v61 = vpop.f32.mrb[73].mxu0 }
 0x857   : > { %v2518_v13 = vpop.f32.mrb[74].mxu0 }
 0x858   : > { %v1802_v36 = vpack.c.bf16 %v2518_v13, %v2517_v30  ;;  %v1741_v2 = vpop.f32.mrb[75].mxu0 }
 0x859   : > { %v1801_v27 = vpack.c.bf16 %v1741_v2, %v1738_v61 }
 0x85b   : > { %1817 = vxpose.xlu0.c.b16.start [1/4] (short) (narrow) %v1801_v27, 64 }
 0x85d   : > { %v2521_v21 = vpop.f32.mrb[76].mxu0 }
 0x85e   : > { %v1754_v31 = vpop.f32.mrb[77].mxu0  ;;  %v2529_v39 = vpop.f32.mrb[56].mxu1 }
 0x85f   : > { %1818 = vxpose.xlu0.c.b16.cont [2/4] (short) (narrow) %v1802_v36, 64  ;;  %v2522_v23 = vpop.f32.mrb[78].mxu0  ;;  %v1786_v22 = vpop.f32.mrb[57].mxu1 }
 0x860   : > { %v1804_v9 = vpack.c.bf16 %v2522_v23, %v2521_v21  ;;  %v1757_v14 = vpop.f32.mrb[79].mxu0  ;;  %v2530_v62 = vpop.f32.mrb[58].mxu1 }
 0x861   : > { %v1803_v43 = vpack.c.bf16 %v1757_v14, %v1754_v31  ;;  %v1808_v40 = vpack.c.bf16 %v2530_v62, %v2529_v39  ;;  %v1789_v41 = vpop.f32.mrb[59].mxu1 }
 0x862   : > { %v1807_v6 = vpack.c.bf16 %v1789_v41, %v1786_v22 }
 0x863   : > { %1819 = vxpose.xlu0.c.b16.cont [3/4] (short) (narrow) %v1803_v43, 64 }
 0x865   : > { %v2525_v15 = vpop.f32.mrb[80].mxu0 }
 0x866   : > { %v1770_v51 = vpop.f32.mrb[81].mxu0 }
 0x867   : > { %1820 = vxpose.xlu0.c.b16.end [4/4] (short) (narrow) %v1804_v9, 64  ;;  %v2526_v17 = vpop.f32.mrb[82].mxu0 }
 0x868   : > { %v1806_v52 = vpack.c.bf16 %v2526_v17, %v2525_v15  ;;  %v1773_v18 = vpop.f32.mrb[83].mxu0 }
 0x869   : > { %v1805_v25 = vpack.c.bf16 %v1773_v18, %v1770_v51 }
 0x86b   : > { %1934 = vxpose.xlu1.c.b16.start [1/4] (short) (narrow) %v1805_v25, 64 }
 0x86f   : > { %1935 = vxpose.xlu1.c.b16.cont [2/4] (short) (narrow) %v1806_v52, 64 }
 0x870   : > { %1322 = vrot.lane.b32.xlu0 %v1292_v60, %s2867_s12 }
 0x873   : > { %1936 = vxpose.xlu1.c.b16.cont [3/4] (short) (narrow) %v1807_v6, 64 }
 0x877   : > { %1937 = vxpose.xlu1.c.b16.end [4/4] (short) (narrow) %v1808_v40, 64 }
 0x87b   : > { %1312 = vrot.lane.b32.xlu1 %v1273_v46, %s2867_s12 }
 0x87f   : > { %1314 = vrot.lane.b32.xlu1 %v1276_v49, %s2867_s12 }
 0x883   : > { %1316 = vrot.lane.b32.xlu1 %v2461_v55, %s2867_s12 }
 0x887   : > { %1318 = vrot.lane.b32.xlu1 %v2462_v47, %s2867_s12 }
 0x88b   : > { %1320 = vrot.lane.b32.xlu1 %v1289_v59, %s2867_s12 }
 0x88f   : > { %1324 = vrot.lane.b32.xlu1 %v2465_v58, %s2867_s12 }
 0x893   : > { %1326 = vrot.lane.b32.xlu1 %v2466_v19, %s2867_s12 }
 0x8c1   : > { %v1825_v54 = vpop.trf.xlu0 }
 0x8c2   : > { %2539 = vmatprep.mubr.msk.bf16.mxu0 %vm402_vm0, %v1825_v54 }
 0x8c5   : > { %v1826_v24 = vpop.trf.xlu0 }
 0x8c6   : > { %2540 = vmatmul.mubr.msk.bf16.vlgmr.msra.gmra.mrb[84].mxu0 %vm402_vm0, %v1826_v24 }
 0x8c7   : > { %2548 = vmatpush3.bf16.msra.mxu0 %v3545_v11 }
 0x8c8   : > { %2549 = vmatprep.subr.bf16.mxu0 %v3550_v8 }
 0x8c9   : > { %v1827_v56 = vpop.trf.xlu0 }
 0x8ca   : > { %2543 = vmatprep.mubr.msk.bf16.mxu0 %vm402_vm0, %v1827_v56 }
 0x8cb   : > { %2550 = vmatpush3.bf16.msra.mxu0 %v3550_v8 }
 0x8cc   : > { %2551 = vmatprep.subr.bf16.mxu0 %v3558_v37 }
 0x8cd   : > { %v1828_v10 = vpop.trf.xlu0 }
 0x8ce   : > { %2544 = vmatmul.mubr.msk.bf16.gmra.mrb[88].mxu0 %vm402_vm0, %v1828_v10 }
 0x8cf   : > { %2552 = vmatpush3.bf16.msra.mxu0 %v3558_v37 }
 0x8d0   : > { %2553 = vmatprep.subr.bf16.mxu0 %v3565_v57 }
 0x8d1   : > { %v1942_v63 = vpop.trf.xlu1 }
 0x8d2   : > { %2555 = vmatprep.mubr.msk.bf16.mxu0 %vm402_vm0, %v1942_v63 }
 0x8d3   : > { %2554 = vmatpush3.bf16.msra.mxu0 %v3565_v57 }
 0x8d5   : > { %v1943_v3 = vpop.trf.xlu1 }
 0x8d6   : > { %2556 = vmatmul.mubr.msk.bf16.vlgmr.msra.gmra.mrb[92].mxu0 %vm402_vm0, %v1943_v3 }
 0x8d9   : > { %v1944_v5 = vpop.trf.xlu1 }
 0x8da   : > { %2559 = vmatprep.mubr.msk.bf16.mxu0 %vm402_vm0, %v1944_v5 }
 0x8dd   : > { %v1945_v4 = vpop.trf.xlu1 }
 0x8de   : > { %2560 = vmatmul.mubr.msk.bf16.gmra.mrb[96].mxu0 %vm402_vm0, %v1945_v4 }
 0x8e2   : > { %v1323_v12 = vpop.permute.xlu0 %1322 }
 0x8e3   : > { %v1341_v34 = vsel %vm402_vm0, %v3417_v32, %v1323_v12 }
 0x8e4   : > { %v1356_v7 = vadd.f32 %v3600_v29, %v1341_v34 }
 0x8e6   : > { %1364 = vst [vmem:[%s3605_s23 + $0x28] sm:$0xff] %v1356_v7 }
 0x8ed   : > { %v1313_v45 = vpop.permute.xlu1 %1312 }
 0x8ee   : > { %v1336_v20 = vsel %vm402_vm0, %v3405_v50, %v1313_v45 }
 0x8ef   : > { %v1351_v48 = vadd.f32 %v3600_v29, %v1336_v20 }
 0x8f1   : > { %1359 = vst [vmem:[%s3605_s23] sm:$0xff] %v1351_v48  ;;  %v1315_v26 = vpop.permute.xlu1 %1314 }
 0x8f2   : > { %v1337_v32 = vsel %vm402_vm0, %v3409_v16, %v1315_v26 }
 0x8f3   : > { %v1352_v44 = vadd.f32 %v3600_v29, %v1337_v32 }
 0x8f5   : > { %1360 = vst [vmem:[%s3605_s23 + $0x8] sm:$0xff] %v1352_v44  ;;  %v1317_v35 = vpop.permute.xlu1 %1316 }
 0x8f6   : > { %v1338_v53 = vsel %vm402_vm0, %v3403_v38, %v1317_v35 }
 0x8f7   : > { %v1353_v28 = vadd.f32 %v3600_v29, %v1338_v53 }
 0x8f9   : > { %1361 = vst [vmem:[%s3605_s23 + $0x10] sm:$0xff] %v1353_v28  ;;  %v1319_v50 = vpop.permute.xlu1 %1318 }
 0x8fa   : > { %v1339_v11 = vsel %vm402_vm0, %v3407_v42, %v1319_v50 }
 0x8fb   : > { %v1354_v8 = vadd.f32 %v3600_v29, %v1339_v11 }
 0x8fd   : > { %1362 = vst [vmem:[%s3605_s23 + $0x18] sm:$0xff] %v1354_v8  ;;  %v1321_v16 = vpop.permute.xlu1 %1320 }
 0x8fe   : > { %v1340_v37 = vsel %vm402_vm0, %v3413_v1, %v1321_v16 }
 0x8ff   : > { %v1355_v57 = vadd.f32 %v3600_v29, %v1340_v37 }
 0x901   : > { %1363 = vst [vmem:[%s3605_s23 + $0x20] sm:$0xff] %v1355_v57  ;;  %v1325_v55 = vpop.permute.xlu1 %1324 }
 0x902   : > { %v1342_v38 = vsel %vm402_vm0, %v3411_v0, %v1325_v55 }
 0x903   : > { %v1357_v46 = vadd.f32 %v3600_v29, %v1342_v38 }
 0x905   : > { %1365 = vst [vmem:[%s3605_s23 + $0x30] sm:$0xff] %v1357_v46  ;;  %v1327_v47 = vpop.permute.xlu1 %1326 }
 0x906   : > { %v1343_v42 = vsel %vm402_vm0, %v3415_v33, %v1327_v47 }
 0x907   : > { %v1358_v49 = vadd.f32 %v3600_v29, %v1343_v42 }
 0x909   : > { %1366 = vst [vmem:[%s3605_s23 + $0x38] sm:$0xff] %v1358_v49 }
 0x999   : > { %v2541_v58 = vpop.f32.mrb[84].mxu0 }
 0x99a   : > { %v1903_v59 = vpop.f32.mrb[85].mxu0 }
 0x99b   : > { %v2542_v1 = vpop.f32.mrb[86].mxu0 }
 0x99c   : > { %v1906_v19 = vpop.f32.mrb[87].mxu0 }
 0x9a1   : > { %v2545_v60 = vpop.f32.mrb[88].mxu0 }
 0x9a2   : > { %v1919_v30 = vpop.f32.mrb[89].mxu0 }
 0x9a3   : > { %v2546_v61 = vpop.f32.mrb[90].mxu0 }
 0x9a4   : > { %v1922_v13 = vpop.f32.mrb[91].mxu0 }
 0x9a9   : > { %v2557_v36 = vpop.f32.mrb[92].mxu0 }
 0x9aa   : > { %2039 = vrot.lane.b32.xlu0 %v2557_v36, %s2867_s12  ;;  %v1996_v0 = vpop.f32.mrb[93].mxu0 }
 0x9ab   : > { %v2558_v2 = vpop.f32.mrb[94].mxu0 }
 0x9ac   : > { %2041 = vrot.lane.b32.xlu1 %v2558_v2, %s2867_s12  ;;  %v1999_v27 = vpop.f32.mrb[95].mxu0 }
 0x9ae   : > { %2035 = vrot.lane.b32.xlu0 %v1996_v0, %s2867_s12 }
 0x9b0   : > { %2037 = vrot.lane.b32.xlu1 %v1999_v27, %s2867_s12 }
 0x9b1   : > { %v2561_v33 = vpop.f32.mrb[96].mxu0 }
 0x9b2   : > { %v2012_v21 = vpop.f32.mrb[97].mxu0 }
 0x9b3   : > { %2043 = vrot.lane.b32.xlu0 %v2012_v21, %s2867_s12  ;;  %v2562_v31 = vpop.f32.mrb[98].mxu0 }
 0x9b4   : > { %v2015_v39 = vpop.f32.mrb[99].mxu0 }
 0x9b5   : > { %2045 = vrot.lane.b32.xlu1 %v2015_v39, %s2867_s12 }
 0x9b7   : > { %2047 = vrot.lane.b32.xlu0 %v2561_v33, %s2867_s12 }
 0x9b9   : > { %2049 = vrot.lane.b32.xlu1 %v2562_v31, %s2867_s12  ;;  %s2274_s12 = sshll.u32 %s2922_s22, 11  ;;  %s3679_s22 = scalar_lea.sflag [#allocation3], %s218_s14 }
 0x9ba   : > { %s3670_s6 = scalar_lea.hbm %s3725_s5, %s2274_s12 }
 0xa1c   : > { %v2040_v23 = vpop.permute.xlu0 %2039 }
 0xa1d   : > { %v2061_v22 = vsel %vm402_vm0, %v2541_v58, %v2040_v23 }
 0xa1e   : > { %v2076_v9 = vadd.f32 %v3600_v29, %v2061_v22  ;;  %v2042_v14 = vpop.permute.xlu1 %2041 }
 0xa1f   : > { %v2062_v62 = vsel %vm402_vm0, %v2542_v1, %v2042_v14 }
 0xa20   : > { %2260 = vst [vmem:[%s3605_s23 + $0x50] sm:$0xff] %v2076_v9  ;;  %v2077_v43 = vadd.f32 %v3600_v29, %v2062_v62  ;;  %v2036_v40 = vpop.permute.xlu0 %2035 }
 0xa21   : > { %v2059_v41 = vsel %vm402_vm0, %v1903_v59, %v2036_v40 }
 0xa22   : > { %2261 = vst [vmem:[%s3605_s23 + $0x58] sm:$0xff] %v2077_v43  ;;  %v2074_v6 = vadd.f32 %v3600_v29, %v2059_v41  ;;  %v2038_v15 = vpop.permute.xlu1 %2037 }
 0xa23   : > { %v2060_v51 = vsel %vm402_vm0, %v1906_v19, %v2038_v15 }
 0xa24   : > { %2258 = vst [vmem:[%s3605_s23 + $0x40] sm:$0xff] %v2074_v6  ;;  %v2075_v17 = vadd.f32 %v3600_v29, %v2060_v51 }
 0xa25   : > { %v2044_v52 = vpop.permute.xlu0 %2043 }
 0xa26   : > { %2259 = vst [vmem:[%s3605_s23 + $0x48] sm:$0xff] %v2075_v17  ;;  %v2063_v18 = vsel %vm402_vm0, %v1919_v30, %v2044_v52 }
 0xa27   : > { %v2078_v25 = vadd.f32 %v3600_v29, %v2063_v18  ;;  %v2046_v54 = vpop.permute.xlu1 %2045 }
 0xa28   : > { %v2064_v24 = vsel %vm402_vm0, %v1922_v13, %v2046_v54 }
 0xa29   : > { %2262 = vst [vmem:[%s3605_s23 + $0x60] sm:$0xff] %v2078_v25  ;;  %v2079_v56 = vadd.f32 %v3600_v29, %v2064_v24  ;;  %v2048_v10 = vpop.permute.xlu0 %2047 }
 0xa2a   : > { %v2065_v63 = vsel %vm402_vm0, %v2545_v60, %v2048_v10 }
 0xa2b   : > { %2263 = vst [vmem:[%s3605_s23 + $0x68] sm:$0xff] %v2079_v56  ;;  %v2080_v3 = vadd.f32 %v3600_v29, %v2065_v63  ;;  %v2050_v5 = vpop.permute.xlu1 %2049 }
 0xa2c   : > { %v2066_v4 = vsel %vm402_vm0, %v2546_v61, %v2050_v5 }
 0xa2d   : > { %2264 = vst [vmem:[%s3605_s23 + $0x70] sm:$0xff] %v2080_v3  ;;  %v2081_v12 = vadd.f32 %v3600_v29, %v2066_v4 }
 0xa2f   : > { %2265 = vst [vmem:[%s3605_s23 + $0x78] sm:$0xff] %v2081_v12 }
 0xa30   : > { %2815 = shalt.err (!%p2812_p3)
}
 0xa31   : > { %s2816_s11 = scalar_lea.hbm %s3670_s6, 2048  ;;  %s2820_s15 = scalar_lea.hbm %s3725_s5, 4096 }
 0xa32   : > { %p2817_p4 = scmp.ne.s32.totalorder %s3670_s6, %s2816_s11  ;;  %p2821_p9 = scmp.lt.u32.totalorder %s3670_s6, %s3725_s5 }
 0xa33   : > { %p2822_p10 = scmp.lt.u32.totalorder %s2820_s15, %s2816_s11  ;;  %p2824_p12 = scmp.lt.u32.totalorder %s2816_s11, %s3670_s6 }
 0xa34   : > { %p2818_p7 = pnand %p2817_p4, %p2939_p5 }
 0xa35   : > { %p2823_p11 = por %p2822_p10, %p2821_p9 }
 0xa36   : > { %p2819_p8 = pneg %p2818_p7 }
 0xa37   : > { %p2825_p13 = por %p2824_p12, %p2823_p11 }
 0xa39   : > { %p2826_p0 = pnand %p2825_p13, %p2819_p8 }
 0xa3b   : > { %2829 = shalt.err (!%p2826_p0)
}
 0xa3c   : > { %s2869_s23 = smov 128   ;;  %s2870_s12 = smov 8  }
 0xa3d   : > { %2595 = dma.vmem_to_hbm [thread:$0]  (%p2939_p5), %s3672_s25, 2048, %s3670_s6, %s3679_s22, %s2869_s23, %s2869_s23, %s2870_s12  }
 0xa3e PF: > { %p2601_p1 = scmp.ge.s32.totalorder %s2864_s21, 2  ;;  %s2121_s26 = sand.u32 1, %s2852_s18  }
 0xa3f   : > { %s2122_s30 = scalar_lea.sflag [#allocation3], %s2121_s26 }
 0xa40   : > { %p2598_p2 = pnand %p2601_p1, %p2943_p6 }
 0xa42   : > { %2847 = dma.done.wait (!%p2598_p2), %s2122_s30, 2048  }
 0xa43   : > { %2849 = vsyncadd (!%p2598_p2), %s2122_s30, 4294965248  ;;  %p15_p3 = scmp.ge.s32.totalorder %s2926_s24, 4   ;;  %s3728_s18 = smov %s2856_s19 }
 0xa44   : > { %s3729_s19 = smov %s2860_s20  ;;  %s3730_s20 = smov %s2937_s27 }
 0xa45   : > { %s3731_s21 = smov %s2926_s24  ;;  %17 = sbr.rel (!%p15_p3) target bundleno = 3 (0x3), region = 76 }
 0xa4c   :  { %2127 = vsyncpa [#allocation3], 1 }
 0xa4d   :  { %2129 = vsyncpa [#allocation3 + $0x1], 1 }

</bundles_post_ra>
